<compile_context>
chip_gen: v5e
topology: v5e:2x2
jax: 0.10.0
libtpu: 0.0.40
codegen_flags: <defaults>
</compile_context>

<pallas_src>
import functools

import jax
import jax.numpy as jnp
from jax.experimental import pallas as pl
from jax.experimental.pallas import tpu as pltpu


# ----------------------------------------------------------------------------
# In-kernel math helpers
# ----------------------------------------------------------------------------
def _gelu_exact(x):
    # PyTorch nn.GELU() default (approximate='none') -> erf-based GELU.
    return 0.5 * x * (1.0 + jax.lax.erf(x * 0.7071067811865476))


def _layernorm(x, g, b):
    # LayerNorm over last dim, eps=1e-5 (PyTorch default), biased variance, f32.
    mu = jnp.mean(x, axis=-1, keepdims=True)
    xc = x - mu
    var = jnp.mean(xc * xc, axis=-1, keepdims=True)
    return xc * jax.lax.rsqrt(var + 1e-5) * g + b


# ----------------------------------------------------------------------------
# Pallas kernels
# ----------------------------------------------------------------------------
def _embed_kernel(x_ref, w_ref, b_ref, o_ref):
    # Patch-embedding matmul: o = x @ w + b   (one branch per grid step)
    o_ref[...] = (
        jnp.dot(x_ref[...], w_ref[...], preferred_element_type=jnp.float32)
        + b_ref[...]
    ).astype(o_ref.dtype)


def _mixer_kernel(
    x_ref,            # (P, C)   one (branch, batch) slab, C in lanes
    ltg_ref, ltb_ref,  # (1, C)   token-mix LayerNorm gamma / beta
    tw1t_ref,          # (T, P)   token MLP Lin1 weight (torch layout, used on the left)
    tb1_ref,           # (T, 1)
    tw2t_ref,          # (P, T)   token MLP Lin2 weight
    tb2_ref,           # (P, 1)
    lcg_ref, lcb_ref,  # (1, C)   channel-mix LayerNorm gamma / beta
    cw1_ref,           # (C, H)
    cb1_ref,           # (1, H)
    cw2_ref,           # (H, C)
    cb2_ref,           # (1, C)
    o_ref,             # (P, C)
):
    x = x_ref[...].astype(jnp.float32)

    # ---- token mixing: LN over C, MLP over P (C stays in lanes) ----
    y = _layernorm(x, ltg_ref[...], ltb_ref[...])                       # (P, C)
    h = jnp.dot(tw1t_ref[...], y, preferred_element_type=jnp.float32)   # (T, C)
    h = _gelu_exact(h + tb1_ref[...])
    tmix = jnp.dot(tw2t_ref[...], h, preferred_element_type=jnp.float32)  # (P, C)
    x_tok = x + (tmix + tb2_ref[...])                                   # residual

    # ---- channel mixing: LN over C, MLP over C ----
    z = _layernorm(x_tok, lcg_ref[...], lcb_ref[...])                   # (P, C)
    h2 = jnp.dot(z, cw1_ref[...], preferred_element_type=jnp.float32)   # (P, H)
    h2 = _gelu_exact(h2 + cb1_ref[...])
    cmix = jnp.dot(h2, cw2_ref[...], preferred_element_type=jnp.float32) + cb2_ref[...]

    o_ref[...] = (x_tok + cmix).astype(o_ref.dtype)                     # residual


def _head_kernel(x_ref, g_ref, b_ref, w_ref, cb_ref, o_ref):
    # Fused: LayerNorm(6*hidden) -> mean over patches -> classifier matmul.
    x = x_ref[...].astype(jnp.float32)                 # (B, P, D)
    xn = _layernorm(x, g_ref[...], b_ref[...])         # (B, P, D)
    pooled = jnp.mean(xn, axis=1)                      # (B, D)
    o_ref[...] = (
        jnp.dot(pooled, w_ref[...], preferred_element_type=jnp.float32)
        + cb_ref[...]
    ).astype(o_ref.dtype)


# ----------------------------------------------------------------------------
# pallas_call wrappers
# ----------------------------------------------------------------------------
def pallas_embed(xp, w, b):
    # xp: (S, M, K)  w: (S, K, H)  b: (S, 1, H)  ->  (S, M, H)
    S, M, K = xp.shape
    H = w.shape[2]
    return pl.pallas_call(
        _embed_kernel,
        out_shape=jax.ShapeDtypeStruct((S, M, H), xp.dtype),
        grid=(S,),
        in_specs=[
            pl.BlockSpec((None, M, K), lambda s: (s, 0, 0)),
            pl.BlockSpec((None, K, H), lambda s: (s, 0, 0)),
            pl.BlockSpec((None, 1, H), lambda s: (s, 0, 0)),
        ],
        out_specs=pl.BlockSpec((None, M, H), lambda s: (s, 0, 0)),
        compiler_params=pltpu.CompilerParams(dimension_semantics=("parallel",)),
    )(xp, w, b)


def pallas_mixer(xs, p):
    # xs: (S, B, P, C) stacked branches.  p holds per-branch stacked weights.
    S, B, P, C = xs.shape
    T = p["tok_w1t"].shape[1]
    H = p["ch_w1"].shape[2]

    x_spec = pl.BlockSpec((None, None, P, C), lambda s, b: (s, b, 0, 0))

    def wspec(d1, d2):
        return pl.BlockSpec((None, d1, d2), lambda s, b: (s, 0, 0))

    return pl.pallas_call(
        _mixer_kernel,
        out_shape=jax.ShapeDtypeStruct((S, B, P, C), xs.dtype),
        grid=(S, B),
        in_specs=[
            x_spec,
            wspec(1, C), wspec(1, C),        # ln_tok gamma / beta
            wspec(T, P), wspec(T, 1),        # token MLP Lin1
            wspec(P, T), wspec(P, 1),        # token MLP Lin2
            wspec(1, C), wspec(1, C),        # ln_ch gamma / beta
            wspec(C, H), wspec(1, H),        # channel MLP Lin1
            wspec(H, C), wspec(1, C),        # channel MLP Lin2
        ],
        out_specs=x_spec,
        compiler_params=pltpu.CompilerParams(
            dimension_semantics=("parallel", "parallel")),
    )(xs,
      p["ln_tok_g"], p["ln_tok_b"],
      p["tok_w1t"], p["tok_b1"], p["tok_w2t"], p["tok_b2"],
      p["ln_ch_g"], p["ln_ch_b"],
      p["ch_w1"], p["ch_b1"], p["ch_w2"], p["ch_b2"])


def pallas_head(x, g, b, w, cb):
    # x: (B, P, D)  ->  logits (B, num_classes)
    B, P, D = x.shape
    NC = w.shape[1]
    return pl.pallas_call(
        _head_kernel,
        out_shape=jax.ShapeDtypeStruct((B, NC), x.dtype),
        grid=(1,),
        in_specs=[
            pl.BlockSpec((B, P, D), lambda i: (0, 0, 0)),
            pl.BlockSpec((1, D), lambda i: (0, 0)),
            pl.BlockSpec((1, D), lambda i: (0, 0)),
            pl.BlockSpec((D, NC), lambda i: (0, 0)),
            pl.BlockSpec((1, NC), lambda i: (0, 0)),
        ],
        out_specs=pl.BlockSpec((B, NC), lambda i: (0, 0)),
    )(x, g, b, w, cb)


# ----------------------------------------------------------------------------
# Model glue
# ----------------------------------------------------------------------------
def _patchify(x_nchw, patch):
    # Conv2d(kernel=stride=patch) == patchify + matmul; patchify done here.
    # TODO(synk): a (C, patch, patch) window block violates the (8,128)
    # BlockSpec rule, so the patch extraction stays in XLA; only the matmul
    # runs in Pallas.
    b, c, h, w = x_nchw.shape
    gh, gw = h // patch, w // patch
    xp = x_nchw.reshape(b, c, gh, patch, gw, patch)
    xp = jnp.transpose(xp, (0, 2, 4, 1, 3, 5)).reshape(b * gh * gw, c * patch * patch)
    return xp


def _mixer_pair(x_img, x_sv, p):
    ys = pallas_mixer(jnp.stack([x_img, x_sv]), p)
    return ys[0], ys[1]


def _mixer_single(x, p):
    return pallas_mixer(x[None], p)[0]


def mmf_mlpmixer_forward(img, sv, params, patch):
    b = img.shape[0]

    # Patch embedding (both modalities in one stacked kernel call).
    xp = jnp.stack([_patchify(img, patch), _patchify(sv, patch)])    # (2, B*P, K)
    emb = pallas_embed(xp, params["emb_w"], params["emb_b"])         # (2, B*P, hidden)
    hidden = emb.shape[-1]
    npatch = emb.shape[1] // b
    x_img = emb[0].reshape(b, npatch, hidden)
    x_sv = emb[1].reshape(b, npatch, hidden)

    # Mixer layer 1 (img + sv in one fused kernel).
    x_img_1, x_sv_1 = _mixer_pair(x_img, x_sv, params["mixer1"])

    # Early fusion block.
    x_fuse_early = jnp.concatenate([x_img_1, x_sv_1], axis=2)
    x_fuse_early = _mixer_single(x_fuse_early, params["fuse_early"])

    # Mixer layer 2.
    x_sv_1b = x_img_1 + x_sv_1
    x_img_2, x_sv_2 = _mixer_pair(x_img_1, x_sv_1b, params["mixer2"])
    x_img = x_img + x_img_2
    x_sv = x_sv + x_sv_2 + x_img_2

    # Mixer layer 3.
    x_img_3, x_sv_3 = _mixer_pair(x_img, x_sv, params["mixer3"])
    x_sv_3 = x_img_3 + x_sv_3

    # Mixer layer 4.
    x_img_4, x_sv_4 = _mixer_pair(x_img_3, x_sv_3, params["mixer4"])

    # Late fusion block.
    x_fuse_late = jnp.concatenate([x_img_4, x_sv_4], axis=2)
    x_fuse_late = _mixer_single(x_fuse_late, params["fuse_late"])

    x_img = x_img + x_img_4
    x_sv = x_sv + x_sv_4

    # Fused head: LN(6*hidden) -> mean over patches -> classifier.
    x = jnp.concatenate([x_img, x_sv, x_fuse_early, x_fuse_late], axis=2)
    return pallas_head(x, params["norm_g"], params["norm_b"],
                       params["cls_w"], params["cls_b"])


# ----------------------------------------------------------------------------
# Deterministic parameter construction (matches module shapes, synthetic init)
# ----------------------------------------------------------------------------
def _init_mixer_stacked(key, S, npatch, nchan, tok_hidden, ch_hidden):
    keys = jax.random.split(key, 4)
    return dict(
        ln_tok_g=jnp.ones((S, 1, nchan), jnp.float32),
        ln_tok_b=jnp.zeros((S, 1, nchan), jnp.float32),
        # token MLP weights stored for LEFT multiplication (torch (out,in) layout)
        tok_w1t=0.02 * jax.random.normal(keys[0], (S, tok_hidden, npatch), jnp.float32),
        tok_b1=jnp.zeros((S, tok_hidden, 1), jnp.float32),
        tok_w2t=0.02 * jax.random.normal(keys[1], (S, npatch, tok_hidden), jnp.float32),
        tok_b2=jnp.zeros((S, npatch, 1), jnp.float32),
        ln_ch_g=jnp.ones((S, 1, nchan), jnp.float32),
        ln_ch_b=jnp.zeros((S, 1, nchan), jnp.float32),
        ch_w1=0.02 * jax.random.normal(keys[2], (S, nchan, ch_hidden), jnp.float32),
        ch_b1=jnp.zeros((S, 1, ch_hidden), jnp.float32),
        ch_w2=0.02 * jax.random.normal(keys[3], (S, ch_hidden, nchan), jnp.float32),
        ch_b2=jnp.zeros((S, 1, nchan), jnp.float32),
    )


def init_params(key, *, num_classes, channels, patch, hidden, tok_hidden,
                ch_hidden, npatch):
    keys = jax.random.split(key, 10)
    kin = channels * patch * patch
    params = dict(
        # conv weights folded into (2, C*p*p, hidden) matmul weights (img, sv)
        emb_w=0.02 * jax.random.normal(keys[0], (2, kin, hidden), jnp.float32),
        emb_b=jnp.zeros((2, 1, hidden), jnp.float32),
        norm_g=jnp.ones((1, hidden * 6), jnp.float32),
        norm_b=jnp.zeros((1, hidden * 6), jnp.float32),
        # Classifier: nn.init.zeros_(weight); bias from PyTorch default uniform
        cls_w=jnp.zeros((hidden * 6, num_classes), jnp.float32),
        cls_b=jax.random.uniform(
            keys[1], (1, num_classes), jnp.float32,
            minval=-1.0 / (hidden * 6) ** 0.5, maxval=1.0 / (hidden * 6) ** 0.5),
    )
    for li, name in enumerate(["mixer1", "mixer2", "mixer3", "mixer4"]):
        params[name] = _init_mixer_stacked(
            keys[2 + li], 2, npatch, hidden, tok_hidden, ch_hidden)
    params["fuse_early"] = _init_mixer_stacked(
        keys[6], 1, npatch, hidden * 2, tok_hidden, ch_hidden)
    params["fuse_late"] = _init_mixer_stacked(
        keys[7], 1, npatch, hidden * 2, tok_hidden, ch_hidden)
    return params


# ----------------------------------------------------------------------------
if __name__ == "__main__":
    # Small config consistent with the module's constructor semantics.
    num_classes = 5
    image_size = 32
    channels = 4
    patch_size = 16
    hidden_dim = 32
    tokens_hidden_dim = 16
    channels_hidden_dim = 64
    batch = 2
    num_patches = (image_size // patch_size) ** 2  # = 4

    key = jax.random.PRNGKey(0)
    k_img, k_sv, k_par = jax.random.split(key, 3)
    img = jax.random.normal(k_img, (batch, channels, image_size, image_size), jnp.float32)
    sv = jax.random.normal(k_sv, (batch, channels, image_size, image_size), jnp.float32)

    params = init_params(
        k_par,
        num_classes=num_classes,
        channels=channels,
        patch=patch_size,
        hidden=hidden_dim,
        tok_hidden=tokens_hidden_dim,
        ch_hidden=channels_hidden_dim,
        npatch=num_patches,
    )

    fwd = jax.jit(functools.partial(mmf_mlpmixer_forward, patch=patch_size))
    out = fwd(img, sv, params)
    out = jax.block_until_ready(out)
    assert out.shape == (batch, num_classes), out.shape
    print("KERNEL_OK")
</pallas_src>

<mosaic_0001>
module attributes {stable_mosaic.version = 11 : i64} {
  func.func @_embed_kernel(%arg0: i32, %arg1: memref<1x8x1024xf32, #tpu.memory_space<vmem>>, %arg2: memref<1x1024x32xf32, #tpu.memory_space<vmem>>, %arg3: memref<1x1x32xf32, #tpu.memory_space<vmem>>, %arg4: memref<1x8x32xf32, #tpu.memory_space<vmem>>) attributes {dimension_semantics = [#tpu.dimension_semantics<parallel>], iteration_bounds = array<i64: 2>, scalar_prefetch = 0 : i64, scratch_operands = 0 : i64, tpu.core_type = #tpu.core_type<tc>, window_params = [{transform_indices = @transform_0, window_bounds = array<i64: 1, 8, 1024>}, {transform_indices = @transform_1, window_bounds = array<i64: 1, 1024, 32>}, {transform_indices = @transform_2, window_bounds = array<i64: 1, 1, 32>}, {transform_indices = @transform_3, window_bounds = array<i64: 1, 8, 32>}]} {
    %c0 = arith.constant 0 : index
    %c0_0 = arith.constant 0 : index
    %c0_1 = arith.constant 0 : index
    %0 = vector.load %arg1[%c0, %c0_0, %c0_1] : memref<1x8x1024xf32, #tpu.memory_space<vmem>>, vector<1x8x1024xf32>
    %1 = vector.shape_cast %0 : vector<1x8x1024xf32> to vector<8x1024xf32>
    %c0_2 = arith.constant 0 : index
    %c0_3 = arith.constant 0 : index
    %c0_4 = arith.constant 0 : index
    %2 = vector.load %arg2[%c0_2, %c0_3, %c0_4] : memref<1x1024x32xf32, #tpu.memory_space<vmem>>, vector<1x1024x32xf32>
    %3 = vector.shape_cast %2 : vector<1x1024x32xf32> to vector<1024x32xf32>
    %cst = arith.constant dense<0.000000e+00> : vector<8x32xf32>
    %4 = tpu.matmul %1, %3, %cst {dimension_numbers = #tpu.dot_dimension_numbers<[1], [0], [0], [1], [0, 0, 1, 1], [], []>} : vector<8x1024xf32>, vector<1024x32xf32>, vector<8x32xf32> -> vector<8x32xf32>
    %c0_5 = arith.constant 0 : index
    %c0_6 = arith.constant 0 : index
    %c0_7 = arith.constant 0 : index
    %5 = vector.load %arg3[%c0_5, %c0_6, %c0_7] : memref<1x1x32xf32, #tpu.memory_space<vmem>>, vector<1x1x32xf32>
    %6 = vector.shape_cast %5 : vector<1x1x32xf32> to vector<1x32xf32>
    %7 = vector.broadcast %6 : vector<1x32xf32> to vector<8x32xf32>
    %8 = arith.addf %4, %7 : vector<8x32xf32>
    %c0_8 = arith.constant 0 : index
    %c0_9 = arith.constant 0 : index
    %c0_10 = arith.constant 0 : index
    %9 = vector.load %arg4[%c0_8, %c0_9, %c0_10] : memref<1x8x32xf32, #tpu.memory_space<vmem>>, vector<1x8x32xf32>
    %10 = vector.shape_cast %9 : vector<1x8x32xf32> to vector<8x32xf32>
    %11 = vector.shape_cast %8 : vector<8x32xf32> to vector<1x8x32xf32>
    tpu.vector_store %arg4[%c0_8, %c0_9, %c0_10], %11 {strides = array<i32>} : memref<1x8x32xf32, #tpu.memory_space<vmem>>, vector<1x8x32xf32>,
    return
  }
  func.func @transform_0(%arg0: i32) -> (i32, i32, i32) {
    %c0_i32 = arith.constant 0 : i32
    %c0_i32_0 = arith.constant 0 : i32
    %c0_i32_1 = arith.constant 0 : i32
    return %arg0, %c0_i32, %c0_i32_0 : i32, i32, i32
  }
  func.func @transform_1(%arg0: i32) -> (i32, i32, i32) {
    %c0_i32 = arith.constant 0 : i32
    %c0_i32_0 = arith.constant 0 : i32
    %c0_i32_1 = arith.constant 0 : i32
    return %arg0, %c0_i32, %c0_i32_0 : i32, i32, i32
  }
  func.func @transform_2(%arg0: i32) -> (i32, i32, i32) {
    %c0_i32 = arith.constant 0 : i32
    %c0_i32_0 = arith.constant 0 : i32
    %c0_i32_1 = arith.constant 0 : i32
    return %arg0, %c0_i32, %c0_i32_0 : i32, i32, i32
  }
  func.func @transform_3(%arg0: i32) -> (i32, i32, i32) {
    %c0_i32 = arith.constant 0 : i32
    %c0_i32_0 = arith.constant 0 : i32
    %c0_i32_1 = arith.constant 0 : i32
    return %arg0, %c0_i32, %c0_i32_0 : i32, i32, i32
  }
}

module attributes {stable_mosaic.version = 11 : i64} {
  func.func @_mixer_kernel(%arg0: i32, %arg1: i32, %arg2: memref<1x1x4x32xf32, #tpu.memory_space<vmem>>, %arg3: memref<1x1x32xf32, #tpu.memory_space<vmem>>, %arg4: memref<1x1x32xf32, #tpu.memory_space<vmem>>, %arg5: memref<1x16x4xf32, #tpu.memory_space<vmem>>, %arg6: memref<1x16x1xf32, #tpu.memory_space<vmem>>, %arg7: memref<1x4x16xf32, #tpu.memory_space<vmem>>, %arg8: memref<1x4x1xf32, #tpu.memory_space<vmem>>, %arg9: memref<1x1x32xf32, #tpu.memory_space<vmem>>, %arg10: memref<1x1x32xf32, #tpu.memory_space<vmem>>, %arg11: memref<1x32x64xf32, #tpu.memory_space<vmem>>, %arg12: memref<1x1x64xf32, #tpu.memory_space<vmem>>, %arg13: memref<1x64x32xf32, #tpu.memory_space<vmem>>, %arg14: memref<1x1x32xf32, #tpu.memory_space<vmem>>, %arg15: memref<1x1x4x32xf32, #tpu.memory_space<vmem>>) attributes {dimension_semantics = [#tpu.dimension_semantics<parallel>, #tpu.dimension_semantics<parallel>], iteration_bounds = array<i64: 2, 2>, scalar_prefetch = 0 : i64, scratch_operands = 0 : i64, tpu.core_type = #tpu.core_type<tc>, window_params = [{transform_indices = @transform_0, window_bounds = array<i64: 1, 1, 4, 32>}, {transform_indices = @transform_1, window_bounds = array<i64: 1, 1, 32>}, {transform_indices = @transform_2, window_bounds = array<i64: 1, 1, 32>}, {transform_indices = @transform_3, window_bounds = array<i64: 1, 16, 4>}, {transform_indices = @transform_4, window_bounds = array<i64: 1, 16, 1>}, {transform_indices = @transform_5, window_bounds = array<i64: 1, 4, 16>}, {transform_indices = @transform_6, window_bounds = array<i64: 1, 4, 1>}, {transform_indices = @transform_7, window_bounds = array<i64: 1, 1, 32>}, {transform_indices = @transform_8, window_bounds = array<i64: 1, 1, 32>}, {transform_indices = @transform_9, window_bounds = array<i64: 1, 32, 64>}, {transform_indices = @transform_10, window_bounds = array<i64: 1, 1, 64>}, {transform_indices = @transform_11, window_bounds = array<i64: 1, 64, 32>}, {transform_indices = @transform_12, window_bounds = array<i64: 1, 1, 32>}, {transform_indices = @transform_13, window_bounds = array<i64: 1, 1, 4, 32>}]} {
    %c0 = arith.constant 0 : index
    %c0_0 = arith.constant 0 : index
    %c0_1 = arith.constant 0 : index
    %c0_2 = arith.constant 0 : index
    %0 = vector.load %arg2[%c0, %c0_0, %c0_1, %c0_2] : memref<1x1x4x32xf32, #tpu.memory_space<vmem>>, vector<1x1x4x32xf32>
    %1 = vector.shape_cast %0 : vector<1x1x4x32xf32> to vector<4x32xf32>
    %c0_3 = arith.constant 0 : index
    %c0_4 = arith.constant 0 : index
    %c0_5 = arith.constant 0 : index
    %2 = vector.load %arg3[%c0_3, %c0_4, %c0_5] : memref<1x1x32xf32, #tpu.memory_space<vmem>>, vector<1x1x32xf32>
    %3 = vector.shape_cast %2 : vector<1x1x32xf32> to vector<1x32xf32>
    %c0_6 = arith.constant 0 : index
    %c0_7 = arith.constant 0 : index
    %c0_8 = arith.constant 0 : index
    %4 = vector.load %arg4[%c0_6, %c0_7, %c0_8] : memref<1x1x32xf32, #tpu.memory_space<vmem>>, vector<1x1x32xf32>
    %5 = vector.shape_cast %4 : vector<1x1x32xf32> to vector<1x32xf32>
    %cst = arith.constant dense<0.000000e+00> : vector<4xf32>
    %6 = vector.multi_reduction <add>, %1, %cst [1] : vector<4x32xf32> to vector<4xf32>
    %7 = vector.shape_cast %6 : vector<4xf32> to vector<4x1xf32>
    %cst_9 = arith.constant 3.200000e+01 : f32
    %8 = vector.broadcast %cst_9 : f32 to vector<4x1xf32>
    %9 = arith.divf %7, %8 : vector<4x1xf32>
    %10 = vector.broadcast %9 : vector<4x1xf32> to vector<4x32xf32>
    %11 = arith.subf %1, %10 : vector<4x32xf32>
    %12 = arith.mulf %11, %11 : vector<4x32xf32>
    %cst_10 = arith.constant dense<0.000000e+00> : vector<4xf32>
    %13 = vector.multi_reduction <add>, %12, %cst_10 [1] : vector<4x32xf32> to vector<4xf32>
    %14 = vector.shape_cast %13 : vector<4xf32> to vector<4x1xf32>
    %cst_11 = arith.constant 3.200000e+01 : f32
    %15 = vector.broadcast %cst_11 : f32 to vector<4x1xf32>
    %16 = arith.divf %14, %15 : vector<4x1xf32>
    %cst_12 = arith.constant 9.99999974E-6 : f32
    %17 = vector.broadcast %cst_12 : f32 to vector<4x1xf32>
    %18 = arith.addf %16, %17 : vector<4x1xf32>
    %19 = math.rsqrt %18 : vector<4x1xf32>
    %20 = vector.broadcast %19 : vector<4x1xf32> to vector<4x32xf32>
    %21 = arith.mulf %11, %20 : vector<4x32xf32>
    %22 = vector.broadcast %3 : vector<1x32xf32> to vector<4x32xf32>
    %23 = arith.mulf %21, %22 : vector<4x32xf32>
    %24 = vector.broadcast %5 : vector<1x32xf32> to vector<4x32xf32>
    %25 = arith.addf %23, %24 : vector<4x32xf32>
    %c0_13 = arith.constant 0 : index
    %c0_14 = arith.constant 0 : index
    %c0_15 = arith.constant 0 : index
    %26 = vector.load %arg5[%c0_13, %c0_14, %c0_15] : memref<1x16x4xf32, #tpu.memory_space<vmem>>, vector<1x16x4xf32>
    %27 = vector.shape_cast %26 : vector<1x16x4xf32> to vector<16x4xf32>
    %cst_16 = arith.constant dense<0.000000e+00> : vector<16x32xf32>
    %28 = tpu.matmul %27, %25, %cst_16 {dimension_numbers = #tpu.dot_dimension_numbers<[1], [0], [0], [1], [0, 0, 1, 1], [], []>} : vector<16x4xf32>, vector<4x32xf32>, vector<16x32xf32> -> vector<16x32xf32>
    %c0_17 = arith.constant 0 : index
    %c0_18 = arith.constant 0 : index
    %c0_19 = arith.constant 0 : index
    %29 = vector.load %arg6[%c0_17, %c0_18, %c0_19] : memref<1x16x1xf32, #tpu.memory_space<vmem>>, vector<1x16x1xf32>
    %30 = vector.shape_cast %29 : vector<1x16x1xf32> to vector<16x1xf32>
    %31 = vector.broadcast %30 : vector<16x1xf32> to vector<16x32xf32>
    %32 = arith.addf %28, %31 : vector<16x32xf32>
    %cst_20 = arith.constant 5.000000e-01 : f32
    %33 = vector.broadcast %cst_20 : f32 to vector<16x32xf32>
    %34 = arith.mulf %33, %32 : vector<16x32xf32>
    %cst_21 = arith.constant 0.707106769 : f32
    %35 = vector.broadcast %cst_21 : f32 to vector<16x32xf32>
    %36 = arith.mulf %32, %35 : vector<16x32xf32>
    %37 = math.erf %36 : vector<16x32xf32>
    %cst_22 = arith.constant 1.000000e+00 : f32
    %38 = vector.broadcast %cst_22 : f32 to vector<16x32xf32>
    %39 = arith.addf %38, %37 : vector<16x32xf32>
    %40 = arith.mulf %34, %39 : vector<16x32xf32>
    %c0_23 = arith.constant 0 : index
    %c0_24 = arith.constant 0 : index
    %c0_25 = arith.constant 0 : index
    %41 = vector.load %arg7[%c0_23, %c0_24, %c0_25] : memref<1x4x16xf32, #tpu.memory_space<vmem>>, vector<1x4x16xf32>
    %42 = vector.shape_cast %41 : vector<1x4x16xf32> to vector<4x16xf32>
    %cst_26 = arith.constant dense<0.000000e+00> : vector<4x32xf32>
    %43 = tpu.matmul %42, %40, %cst_26 {dimension_numbers = #tpu.dot_dimension_numbers<[1], [0], [0], [1], [0, 0, 1, 1], [], []>} : vector<4x16xf32>, vector<16x32xf32>, vector<4x32xf32> -> vector<4x32xf32>
    %c0_27 = arith.constant 0 : index
    %c0_28 = arith.constant 0 : index
    %c0_29 = arith.constant 0 : index
    %44 = vector.load %arg8[%c0_27, %c0_28, %c0_29] : memref<1x4x1xf32, #tpu.memory_space<vmem>>, vector<1x4x1xf32>
    %45 = vector.shape_cast %44 : vector<1x4x1xf32> to vector<4x1xf32>
    %46 = vector.broadcast %45 : vector<4x1xf32> to vector<4x32xf32>
    %47 = arith.addf %43, %46 : vector<4x32xf32>
    %48 = arith.addf %1, %47 : vector<4x32xf32>
    %c0_30 = arith.constant 0 : index
    %c0_31 = arith.constant 0 : index
    %c0_32 = arith.constant 0 : index
    %49 = vector.load %arg9[%c0_30, %c0_31, %c0_32] : memref<1x1x32xf32, #tpu.memory_space<vmem>>, vector<1x1x32xf32>
    %50 = vector.shape_cast %49 : vector<1x1x32xf32> to vector<1x32xf32>
    %c0_33 = arith.constant 0 : index
    %c0_34 = arith.constant 0 : index
    %c0_35 = arith.constant 0 : index
    %51 = vector.load %arg10[%c0_33, %c0_34, %c0_35] : memref<1x1x32xf32, #tpu.memory_space<vmem>>, vector<1x1x32xf32>
    %52 = vector.shape_cast %51 : vector<1x1x32xf32> to vector<1x32xf32>
    %cst_36 = arith.constant dense<0.000000e+00> : vector<4xf32>
    %53 = vector.multi_reduction <add>, %48, %cst_36 [1] : vector<4x32xf32> to vector<4xf32>
    %54 = vector.shape_cast %53 : vector<4xf32> to vector<4x1xf32>
    %cst_37 = arith.constant 3.200000e+01 : f32
    %55 = vector.broadcast %cst_37 : f32 to vector<4x1xf32>
    %56 = arith.divf %54, %55 : vector<4x1xf32>
    %57 = vector.broadcast %56 : vector<4x1xf32> to vector<4x32xf32>
    %58 = arith.subf %48, %57 : vector<4x32xf32>
    %59 = arith.mulf %58, %58 : vector<4x32xf32>
    %cst_38 = arith.constant dense<0.000000e+00> : vector<4xf32>
    %60 = vector.multi_reduction <add>, %59, %cst_38 [1] : vector<4x32xf32> to vector<4xf32>
    %61 = vector.shape_cast %60 : vector<4xf32> to vector<4x1xf32>
    %cst_39 = arith.constant 3.200000e+01 : f32
    %62 = vector.broadcast %cst_39 : f32 to vector<4x1xf32>
    %63 = arith.divf %61, %62 : vector<4x1xf32>
    %cst_40 = arith.constant 9.99999974E-6 : f32
    %64 = vector.broadcast %cst_40 : f32 to vector<4x1xf32>
    %65 = arith.addf %63, %64 : vector<4x1xf32>
    %66 = math.rsqrt %65 : vector<4x1xf32>
    %67 = vector.broadcast %66 : vector<4x1xf32> to vector<4x32xf32>
    %68 = arith.mulf %58, %67 : vector<4x32xf32>
    %69 = vector.broadcast %50 : vector<1x32xf32> to vector<4x32xf32>
    %70 = arith.mulf %68, %69 : vector<4x32xf32>
    %71 = vector.broadcast %52 : vector<1x32xf32> to vector<4x32xf32>
    %72 = arith.addf %70, %71 : vector<4x32xf32>
    %c0_41 = arith.constant 0 : index
    %c0_42 = arith.constant 0 : index
    %c0_43 = arith.constant 0 : index
    %73 = vector.load %arg11[%c0_41, %c0_42, %c0_43] : memref<1x32x64xf32, #tpu.memory_space<vmem>>, vector<1x32x64xf32>
    %74 = vector.shape_cast %73 : vector<1x32x64xf32> to vector<32x64xf32>
    %cst_44 = arith.constant dense<0.000000e+00> : vector<4x64xf32>
    %75 = tpu.matmul %72, %74, %cst_44 {dimension_numbers = #tpu.dot_dimension_numbers<[1], [0], [0], [1], [0, 0, 1, 1], [], []>} : vector<4x32xf32>, vector<32x64xf32>, vector<4x64xf32> -> vector<4x64xf32>
    %c0_45 = arith.constant 0 : index
    %c0_46 = arith.constant 0 : index
    %c0_47 = arith.constant 0 : index
    %76 = vector.load %arg12[%c0_45, %c0_46, %c0_47] : memref<1x1x64xf32, #tpu.memory_space<vmem>>, vector<1x1x64xf32>
    %77 = vector.shape_cast %76 : vector<1x1x64xf32> to vector<1x64xf32>
    %78 = vector.broadcast %77 : vector<1x64xf32> to vector<4x64xf32>
    %79 = arith.addf %75, %78 : vector<4x64xf32>
    %cst_48 = arith.constant 5.000000e-01 : f32
    %80 = vector.broadcast %cst_48 : f32 to vector<4x64xf32>
    %81 = arith.mulf %80, %79 : vector<4x64xf32>
    %cst_49 = arith.constant 0.707106769 : f32
    %82 = vector.broadcast %cst_49 : f32 to vector<4x64xf32>
    %83 = arith.mulf %79, %82 : vector<4x64xf32>
    %84 = math.erf %83 : vector<4x64xf32>
    %cst_50 = arith.constant 1.000000e+00 : f32
    %85 = vector.broadcast %cst_50 : f32 to vector<4x64xf32>
    %86 = arith.addf %85, %84 : vector<4x64xf32>
    %87 = arith.mulf %81, %86 : vector<4x64xf32>
    %c0_51 = arith.constant 0 : index
    %c0_52 = arith.constant 0 : index
    %c0_53 = arith.constant 0 : index
    %88 = vector.load %arg13[%c0_51, %c0_52, %c0_53] : memref<1x64x32xf32, #tpu.memory_space<vmem>>, vector<1x64x32xf32>
    %89 = vector.shape_cast %88 : vector<1x64x32xf32> to vector<64x32xf32>
    %cst_54 = arith.constant dense<0.000000e+00> : vector<4x32xf32>
    %90 = tpu.matmul %87, %89, %cst_54 {dimension_numbers = #tpu.dot_dimension_numbers<[1], [0], [0], [1], [0, 0, 1, 1], [], []>} : vector<4x64xf32>, vector<64x32xf32>, vector<4x32xf32> -> vector<4x32xf32>
    %c0_55 = arith.constant 0 : index
    %c0_56 = arith.constant 0 : index
    %c0_57 = arith.constant 0 : index
    %91 = vector.load %arg14[%c0_55, %c0_56, %c0_57] : memref<1x1x32xf32, #tpu.memory_space<vmem>>, vector<1x1x32xf32>
    %92 = vector.shape_cast %91 : vector<1x1x32xf32> to vector<1x32xf32>
    %93 = vector.broadcast %92 : vector<1x32xf32> to vector<4x32xf32>
    %94 = arith.addf %90, %93 : vector<4x32xf32>
    %95 = arith.addf %48, %94 : vector<4x32xf32>
    %c0_58 = arith.constant 0 : index
    %c0_59 = arith.constant 0 : index
    %c0_60 = arith.constant 0 : index
    %c0_61 = arith.constant 0 : index
    %96 = vector.load %arg15[%c0_58, %c0_59, %c0_60, %c0_61] : memref<1x1x4x32xf32, #tpu.memory_space<vmem>>, vector<1x1x4x32xf32>
    %97 = vector.shape_cast %96 : vector<1x1x4x32xf32> to vector<4x32xf32>
    %98 = vector.shape_cast %95 : vector<4x32xf32> to vector<1x1x4x32xf32>
    tpu.vector_store %arg15[%c0_58, %c0_59, %c0_60, %c0_61], %98 {strides = array<i32>} : memref<1x1x4x32xf32, #tpu.memory_space<vmem>>, vector<1x1x4x32xf32>,
    return
  }
  func.func @transform_0(%arg0: i32, %arg1: i32) -> (i32, i32, i32, i32) {
    %c0_i32 = arith.constant 0 : i32
    %c0_i32_0 = arith.constant 0 : i32
    %c0_i32_1 = arith.constant 0 : i32
    return %arg0, %arg1, %c0_i32, %c0_i32_0 : i32, i32, i32, i32
  }
  func.func @transform_1(%arg0: i32, %arg1: i32) -> (i32, i32, i32) {
    %c0_i32 = arith.constant 0 : i32
    %c0_i32_0 = arith.constant 0 : i32
    %c0_i32_1 = arith.constant 0 : i32
    return %arg0, %c0_i32, %c0_i32_0 : i32, i32, i32
  }
  func.func @transform_2(%arg0: i32, %arg1: i32) -> (i32, i32, i32) {
    %c0_i32 = arith.constant 0 : i32
    %c0_i32_0 = arith.constant 0 : i32
    %c0_i32_1 = arith.constant 0 : i32
    return %arg0, %c0_i32, %c0_i32_0 : i32, i32, i32
  }
  func.func @transform_3(%arg0: i32, %arg1: i32) -> (i32, i32, i32) {
    %c0_i32 = arith.constant 0 : i32
    %c0_i32_0 = arith.constant 0 : i32
    %c0_i32_1 = arith.constant 0 : i32
    return %arg0, %c0_i32, %c0_i32_0 : i32, i32, i32
  }
  func.func @transform_4(%arg0: i32, %arg1: i32) -> (i32, i32, i32) {
    %c0_i32 = arith.constant 0 : i32
    %c0_i32_0 = arith.constant 0 : i32
    %c0_i32_1 = arith.constant 0 : i32
    return %arg0, %c0_i32, %c0_i32_0 : i32, i32, i32
  }
  func.func @transform_5(%arg0: i32, %arg1: i32) -> (i32, i32, i32) {
    %c0_i32 = arith.constant 0 : i32
    %c0_i32_0 = arith.constant 0 : i32
    %c0_i32_1 = arith.constant 0 : i32
    return %arg0, %c0_i32, %c0_i32_0 : i32, i32, i32
  }
  func.func @transform_6(%arg0: i32, %arg1: i32) -> (i32, i32, i32) {
    %c0_i32 = arith.constant 0 : i32
    %c0_i32_0 = arith.constant 0 : i32
    %c0_i32_1 = arith.constant 0 : i32
    return %arg0, %c0_i32, %c0_i32_0 : i32, i32, i32
  }
  func.func @transform_7(%arg0: i32, %arg1: i32) -> (i32, i32, i32) {
    %c0_i32 = arith.constant 0 : i32
    %c0_i32_0 = arith.constant 0 : i32
    %c0_i32_1 = arith.constant 0 : i32
    return %arg0, %c0_i32, %c0_i32_0 : i32, i32, i32
  }
  func.func @transform_8(%arg0: i32, %arg1: i32) -> (i32, i32, i32) {
    %c0_i32 = arith.constant 0 : i32
    %c0_i32_0 = arith.constant 0 : i32
    %c0_i32_1 = arith.constant 0 : i32
    return %arg0, %c0_i32, %c0_i32_0 : i32, i32, i32
  }
  func.func @transform_9(%arg0: i32, %arg1: i32) -> (i32, i32, i32) {
    %c0_i32 = arith.constant 0 : i32
    %c0_i32_0 = arith.constant 0 : i32
    %c0_i32_1 = arith.constant 0 : i32
    return %arg0, %c0_i32, %c0_i32_0 : i32, i32, i32
  }
  func.func @transform_10(%arg0: i32, %arg1: i32) -> (i32, i32, i32) {
    %c0_i32 = arith.constant 0 : i32
    %c0_i32_0 = arith.constant 0 : i32
    %c0_i32_1 = arith.constant 0 : i32
    return %arg0, %c0_i32, %c0_i32_0 : i32, i32, i32
  }
  func.func @transform_11(%arg0: i32, %arg1: i32) -> (i32, i32, i32) {
    %c0_i32 = arith.constant 0 : i32
    %c0_i32_0 = arith.constant 0 : i32
    %c0_i32_1 = arith.constant 0 : i32
    return %arg0, %c0_i32, %c0_i32_0 : i32, i32, i32
  }
  func.func @transform_12(%arg0: i32, %arg1: i32) -> (i32, i32, i32) {
    %c0_i32 = arith.constant 0 : i32
    %c0_i32_0 = arith.constant 0 : i32
    %c0_i32_1 = arith.constant 0 : i32
    return %arg0, %c0_i32, %c0_i32_0 : i32, i32, i32
  }
  func.func @transform_13(%arg0: i32, %arg1: i32) -> (i32, i32, i32, i32) {
    %c0_i32 = arith.constant 0 : i32
    %c0_i32_0 = arith.constant 0 : i32
    %c0_i32_1 = arith.constant 0 : i32
    return %arg0, %arg1, %c0_i32, %c0_i32_0 : i32, i32, i32, i32
  }
}

module attributes {stable_mosaic.version = 11 : i64} {
  func.func @_mixer_kernel(%arg0: i32, %arg1: i32, %arg2: memref<1x1x4x64xf32, #tpu.memory_space<vmem>>, %arg3: memref<1x1x64xf32, #tpu.memory_space<vmem>>, %arg4: memref<1x1x64xf32, #tpu.memory_space<vmem>>, %arg5: memref<1x16x4xf32, #tpu.memory_space<vmem>>, %arg6: memref<1x16x1xf32, #tpu.memory_space<vmem>>, %arg7: memref<1x4x16xf32, #tpu.memory_space<vmem>>, %arg8: memref<1x4x1xf32, #tpu.memory_space<vmem>>, %arg9: memref<1x1x64xf32, #tpu.memory_space<vmem>>, %arg10: memref<1x1x64xf32, #tpu.memory_space<vmem>>, %arg11: memref<1x64x64xf32, #tpu.memory_space<vmem>>, %arg12: memref<1x1x64xf32, #tpu.memory_space<vmem>>, %arg13: memref<1x64x64xf32, #tpu.memory_space<vmem>>, %arg14: memref<1x1x64xf32, #tpu.memory_space<vmem>>, %arg15: memref<1x1x4x64xf32, #tpu.memory_space<vmem>>) attributes {dimension_semantics = [#tpu.dimension_semantics<parallel>, #tpu.dimension_semantics<parallel>], iteration_bounds = array<i64: 1, 2>, scalar_prefetch = 0 : i64, scratch_operands = 0 : i64, tpu.core_type = #tpu.core_type<tc>, window_params = [{transform_indices = @transform_0, window_bounds = array<i64: 1, 1, 4, 64>}, {transform_indices = @transform_1, window_bounds = array<i64: 1, 1, 64>}, {transform_indices = @transform_2, window_bounds = array<i64: 1, 1, 64>}, {transform_indices = @transform_3, window_bounds = array<i64: 1, 16, 4>}, {transform_indices = @transform_4, window_bounds = array<i64: 1, 16, 1>}, {transform_indices = @transform_5, window_bounds = array<i64: 1, 4, 16>}, {transform_indices = @transform_6, window_bounds = array<i64: 1, 4, 1>}, {transform_indices = @transform_7, window_bounds = array<i64: 1, 1, 64>}, {transform_indices = @transform_8, window_bounds = array<i64: 1, 1, 64>}, {transform_indices = @transform_9, window_bounds = array<i64: 1, 64, 64>}, {transform_indices = @transform_10, window_bounds = array<i64: 1, 1, 64>}, {transform_indices = @transform_11, window_bounds = array<i64: 1, 64, 64>}, {transform_indices = @transform_12, window_bounds = array<i64: 1, 1, 64>}, {transform_indices = @transform_13, window_bounds = array<i64: 1, 1, 4, 64>}]} {
    %c0 = arith.constant 0 : index
    %c0_0 = arith.constant 0 : index
    %c0_1 = arith.constant 0 : index
    %c0_2 = arith.constant 0 : index
    %0 = vector.load %arg2[%c0, %c0_0, %c0_1, %c0_2] : memref<1x1x4x64xf32, #tpu.memory_space<vmem>>, vector<1x1x4x64xf32>
    %1 = vector.shape_cast %0 : vector<1x1x4x64xf32> to vector<4x64xf32>
    %c0_3 = arith.constant 0 : index
    %c0_4 = arith.constant 0 : index
    %c0_5 = arith.constant 0 : index
    %2 = vector.load %arg3[%c0_3, %c0_4, %c0_5] : memref<1x1x64xf32, #tpu.memory_space<vmem>>, vector<1x1x64xf32>
    %3 = vector.shape_cast %2 : vector<1x1x64xf32> to vector<1x64xf32>
    %c0_6 = arith.constant 0 : index
    %c0_7 = arith.constant 0 : index
    %c0_8 = arith.constant 0 : index
    %4 = vector.load %arg4[%c0_6, %c0_7, %c0_8] : memref<1x1x64xf32, #tpu.memory_space<vmem>>, vector<1x1x64xf32>
    %5 = vector.shape_cast %4 : vector<1x1x64xf32> to vector<1x64xf32>
    %cst = arith.constant dense<0.000000e+00> : vector<4xf32>
    %6 = vector.multi_reduction <add>, %1, %cst [1] : vector<4x64xf32> to vector<4xf32>
    %7 = vector.shape_cast %6 : vector<4xf32> to vector<4x1xf32>
    %cst_9 = arith.constant 6.400000e+01 : f32
    %8 = vector.broadcast %cst_9 : f32 to vector<4x1xf32>
    %9 = arith.divf %7, %8 : vector<4x1xf32>
    %10 = vector.broadcast %9 : vector<4x1xf32> to vector<4x64xf32>
    %11 = arith.subf %1, %10 : vector<4x64xf32>
    %12 = arith.mulf %11, %11 : vector<4x64xf32>
    %cst_10 = arith.constant dense<0.000000e+00> : vector<4xf32>
    %13 = vector.multi_reduction <add>, %12, %cst_10 [1] : vector<4x64xf32> to vector<4xf32>
    %14 = vector.shape_cast %13 : vector<4xf32> to vector<4x1xf32>
    %cst_11 = arith.constant 6.400000e+01 : f32
    %15 = vector.broadcast %cst_11 : f32 to vector<4x1xf32>
    %16 = arith.divf %14, %15 : vector<4x1xf32>
    %cst_12 = arith.constant 9.99999974E-6 : f32
    %17 = vector.broadcast %cst_12 : f32 to vector<4x1xf32>
    %18 = arith.addf %16, %17 : vector<4x1xf32>
    %19 = math.rsqrt %18 : vector<4x1xf32>
    %20 = vector.broadcast %19 : vector<4x1xf32> to vector<4x64xf32>
    %21 = arith.mulf %11, %20 : vector<4x64xf32>
    %22 = vector.broadcast %3 : vector<1x64xf32> to vector<4x64xf32>
    %23 = arith.mulf %21, %22 : vector<4x64xf32>
    %24 = vector.broadcast %5 : vector<1x64xf32> to vector<4x64xf32>
    %25 = arith.addf %23, %24 : vector<4x64xf32>
    %c0_13 = arith.constant 0 : index
    %c0_14 = arith.constant 0 : index
    %c0_15 = arith.constant 0 : index
    %26 = vector.load %arg5[%c0_13, %c0_14, %c0_15] : memref<1x16x4xf32, #tpu.memory_space<vmem>>, vector<1x16x4xf32>
    %27 = vector.shape_cast %26 : vector<1x16x4xf32> to vector<16x4xf32>
    %cst_16 = arith.constant dense<0.000000e+00> : vector<16x64xf32>
    %28 = tpu.matmul %27, %25, %cst_16 {dimension_numbers = #tpu.dot_dimension_numbers<[1], [0], [0], [1], [0, 0, 1, 1], [], []>} : vector<16x4xf32>, vector<4x64xf32>, vector<16x64xf32> -> vector<16x64xf32>
    %c0_17 = arith.constant 0 : index
    %c0_18 = arith.constant 0 : index
    %c0_19 = arith.constant 0 : index
    %29 = vector.load %arg6[%c0_17, %c0_18, %c0_19] : memref<1x16x1xf32, #tpu.memory_space<vmem>>, vector<1x16x1xf32>
    %30 = vector.shape_cast %29 : vector<1x16x1xf32> to vector<16x1xf32>
    %31 = vector.broadcast %30 : vector<16x1xf32> to vector<16x64xf32>
    %32 = arith.addf %28, %31 : vector<16x64xf32>
    %cst_20 = arith.constant 5.000000e-01 : f32
    %33 = vector.broadcast %cst_20 : f32 to vector<16x64xf32>
    %34 = arith.mulf %33, %32 : vector<16x64xf32>
    %cst_21 = arith.constant 0.707106769 : f32
    %35 = vector.broadcast %cst_21 : f32 to vector<16x64xf32>
    %36 = arith.mulf %32, %35 : vector<16x64xf32>
    %37 = math.erf %36 : vector<16x64xf32>
    %cst_22 = arith.constant 1.000000e+00 : f32
    %38 = vector.broadcast %cst_22 : f32 to vector<16x64xf32>
    %39 = arith.addf %38, %37 : vector<16x64xf32>
    %40 = arith.mulf %34, %39 : vector<16x64xf32>
    %c0_23 = arith.constant 0 : index
    %c0_24 = arith.constant 0 : index
    %c0_25 = arith.constant 0 : index
    %41 = vector.load %arg7[%c0_23, %c0_24, %c0_25] : memref<1x4x16xf32, #tpu.memory_space<vmem>>, vector<1x4x16xf32>
    %42 = vector.shape_cast %41 : vector<1x4x16xf32> to vector<4x16xf32>
    %cst_26 = arith.constant dense<0.000000e+00> : vector<4x64xf32>
    %43 = tpu.matmul %42, %40, %cst_26 {dimension_numbers = #tpu.dot_dimension_numbers<[1], [0], [0], [1], [0, 0, 1, 1], [], []>} : vector<4x16xf32>, vector<16x64xf32>, vector<4x64xf32> -> vector<4x64xf32>
    %c0_27 = arith.constant 0 : index
    %c0_28 = arith.constant 0 : index
    %c0_29 = arith.constant 0 : index
    %44 = vector.load %arg8[%c0_27, %c0_28, %c0_29] : memref<1x4x1xf32, #tpu.memory_space<vmem>>, vector<1x4x1xf32>
    %45 = vector.shape_cast %44 : vector<1x4x1xf32> to vector<4x1xf32>
    %46 = vector.broadcast %45 : vector<4x1xf32> to vector<4x64xf32>
    %47 = arith.addf %43, %46 : vector<4x64xf32>
    %48 = arith.addf %1, %47 : vector<4x64xf32>
    %c0_30 = arith.constant 0 : index
    %c0_31 = arith.constant 0 : index
    %c0_32 = arith.constant 0 : index
    %49 = vector.load %arg9[%c0_30, %c0_31, %c0_32] : memref<1x1x64xf32, #tpu.memory_space<vmem>>, vector<1x1x64xf32>
    %50 = vector.shape_cast %49 : vector<1x1x64xf32> to vector<1x64xf32>
    %c0_33 = arith.constant 0 : index
    %c0_34 = arith.constant 0 : index
    %c0_35 = arith.constant 0 : index
    %51 = vector.load %arg10[%c0_33, %c0_34, %c0_35] : memref<1x1x64xf32, #tpu.memory_space<vmem>>, vector<1x1x64xf32>
    %52 = vector.shape_cast %51 : vector<1x1x64xf32> to vector<1x64xf32>
    %cst_36 = arith.constant dense<0.000000e+00> : vector<4xf32>
    %53 = vector.multi_reduction <add>, %48, %cst_36 [1] : vector<4x64xf32> to vector<4xf32>
    %54 = vector.shape_cast %53 : vector<4xf32> to vector<4x1xf32>
    %cst_37 = arith.constant 6.400000e+01 : f32
    %55 = vector.broadcast %cst_37 : f32 to vector<4x1xf32>
    %56 = arith.divf %54, %55 : vector<4x1xf32>
    %57 = vector.broadcast %56 : vector<4x1xf32> to vector<4x64xf32>
    %58 = arith.subf %48, %57 : vector<4x64xf32>
    %59 = arith.mulf %58, %58 : vector<4x64xf32>
    %cst_38 = arith.constant dense<0.000000e+00> : vector<4xf32>
    %60 = vector.multi_reduction <add>, %59, %cst_38 [1] : vector<4x64xf32> to vector<4xf32>
    %61 = vector.shape_cast %60 : vector<4xf32> to vector<4x1xf32>
    %cst_39 = arith.constant 6.400000e+01 : f32
    %62 = vector.broadcast %cst_39 : f32 to vector<4x1xf32>
    %63 = arith.divf %61, %62 : vector<4x1xf32>
    %cst_40 = arith.constant 9.99999974E-6 : f32
    %64 = vector.broadcast %cst_40 : f32 to vector<4x1xf32>
    %65 = arith.addf %63, %64 : vector<4x1xf32>
    %66 = math.rsqrt %65 : vector<4x1xf32>
    %67 = vector.broadcast %66 : vector<4x1xf32> to vector<4x64xf32>
    %68 = arith.mulf %58, %67 : vector<4x64xf32>
    %69 = vector.broadcast %50 : vector<1x64xf32> to vector<4x64xf32>
    %70 = arith.mulf %68, %69 : vector<4x64xf32>
    %71 = vector.broadcast %52 : vector<1x64xf32> to vector<4x64xf32>
    %72 = arith.addf %70, %71 : vector<4x64xf32>
    %c0_41 = arith.constant 0 : index
    %c0_42 = arith.constant 0 : index
    %c0_43 = arith.constant 0 : index
    %73 = vector.load %arg11[%c0_41, %c0_42, %c0_43] : memref<1x64x64xf32, #tpu.memory_space<vmem>>, vector<1x64x64xf32>
    %74 = vector.shape_cast %73 : vector<1x64x64xf32> to vector<64x64xf32>
    %cst_44 = arith.constant dense<0.000000e+00> : vector<4x64xf32>
    %75 = tpu.matmul %72, %74, %cst_44 {dimension_numbers = #tpu.dot_dimension_numbers<[1], [0], [0], [1], [0, 0, 1, 1], [], []>} : vector<4x64xf32>, vector<64x64xf32>, vector<4x64xf32> -> vector<4x64xf32>
    %c0_45 = arith.constant 0 : index
    %c0_46 = arith.constant 0 : index
    %c0_47 = arith.constant 0 : index
    %76 = vector.load %arg12[%c0_45, %c0_46, %c0_47] : memref<1x1x64xf32, #tpu.memory_space<vmem>>, vector<1x1x64xf32>
    %77 = vector.shape_cast %76 : vector<1x1x64xf32> to vector<1x64xf32>
    %78 = vector.broadcast %77 : vector<1x64xf32> to vector<4x64xf32>
    %79 = arith.addf %75, %78 : vector<4x64xf32>
    %cst_48 = arith.constant 5.000000e-01 : f32
    %80 = vector.broadcast %cst_48 : f32 to vector<4x64xf32>
    %81 = arith.mulf %80, %79 : vector<4x64xf32>
    %cst_49 = arith.constant 0.707106769 : f32
    %82 = vector.broadcast %cst_49 : f32 to vector<4x64xf32>
    %83 = arith.mulf %79, %82 : vector<4x64xf32>
    %84 = math.erf %83 : vector<4x64xf32>
    %cst_50 = arith.constant 1.000000e+00 : f32
    %85 = vector.broadcast %cst_50 : f32 to vector<4x64xf32>
    %86 = arith.addf %85, %84 : vector<4x64xf32>
    %87 = arith.mulf %81, %86 : vector<4x64xf32>
    %c0_51 = arith.constant 0 : index
    %c0_52 = arith.constant 0 : index
    %c0_53 = arith.constant 0 : index
    %88 = vector.load %arg13[%c0_51, %c0_52, %c0_53] : memref<1x64x64xf32, #tpu.memory_space<vmem>>, vector<1x64x64xf32>
    %89 = vector.shape_cast %88 : vector<1x64x64xf32> to vector<64x64xf32>
    %cst_54 = arith.constant dense<0.000000e+00> : vector<4x64xf32>
    %90 = tpu.matmul %87, %89, %cst_54 {dimension_numbers = #tpu.dot_dimension_numbers<[1], [0], [0], [1], [0, 0, 1, 1], [], []>} : vector<4x64xf32>, vector<64x64xf32>, vector<4x64xf32> -> vector<4x64xf32>
    %c0_55 = arith.constant 0 : index
    %c0_56 = arith.constant 0 : index
    %c0_57 = arith.constant 0 : index
    %91 = vector.load %arg14[%c0_55, %c0_56, %c0_57] : memref<1x1x64xf32, #tpu.memory_space<vmem>>, vector<1x1x64xf32>
    %92 = vector.shape_cast %91 : vector<1x1x64xf32> to vector<1x64xf32>
    %93 = vector.broadcast %92 : vector<1x64xf32> to vector<4x64xf32>
    %94 = arith.addf %90, %93 : vector<4x64xf32>
    %95 = arith.addf %48, %94 : vector<4x64xf32>
    %c0_58 = arith.constant 0 : index
    %c0_59 = arith.constant 0 : index
    %c0_60 = arith.constant 0 : index
    %c0_61 = arith.constant 0 : index
    %96 = vector.load %arg15[%c0_58, %c0_59, %c0_60, %c0_61] : memref<1x1x4x64xf32, #tpu.memory_space<vmem>>, vector<1x1x4x64xf32>
    %97 = vector.shape_cast %96 : vector<1x1x4x64xf32> to vector<4x64xf32>
    %98 = vector.shape_cast %95 : vector<4x64xf32> to vector<1x1x4x64xf32>
    tpu.vector_store %arg15[%c0_58, %c0_59, %c0_60, %c0_61], %98 {strides = array<i32>} : memref<1x1x4x64xf32, #tpu.memory_space<vmem>>, vector<1x1x4x64xf32>,
    return
  }
  func.func @transform_0(%arg0: i32, %arg1: i32) -> (i32, i32, i32, i32) {
    %c0_i32 = arith.constant 0 : i32
    %c0_i32_0 = arith.constant 0 : i32
    %c0_i32_1 = arith.constant 0 : i32
    return %arg0, %arg1, %c0_i32, %c0_i32_0 : i32, i32, i32, i32
  }
  func.func @transform_1(%arg0: i32, %arg1: i32) -> (i32, i32, i32) {
    %c0_i32 = arith.constant 0 : i32
    %c0_i32_0 = arith.constant 0 : i32
    %c0_i32_1 = arith.constant 0 : i32
    return %arg0, %c0_i32, %c0_i32_0 : i32, i32, i32
  }
  func.func @transform_2(%arg0: i32, %arg1: i32) -> (i32, i32, i32) {
    %c0_i32 = arith.constant 0 : i32
    %c0_i32_0 = arith.constant 0 : i32
    %c0_i32_1 = arith.constant 0 : i32
    return %arg0, %c0_i32, %c0_i32_0 : i32, i32, i32
  }
  func.func @transform_3(%arg0: i32, %arg1: i32) -> (i32, i32, i32) {
    %c0_i32 = arith.constant 0 : i32
    %c0_i32_0 = arith.constant 0 : i32
    %c0_i32_1 = arith.constant 0 : i32
    return %arg0, %c0_i32, %c0_i32_0 : i32, i32, i32
  }
  func.func @transform_4(%arg0: i32, %arg1: i32) -> (i32, i32, i32) {
    %c0_i32 = arith.constant 0 : i32
    %c0_i32_0 = arith.constant 0 : i32
    %c0_i32_1 = arith.constant 0 : i32
    return %arg0, %c0_i32, %c0_i32_0 : i32, i32, i32
  }
  func.func @transform_5(%arg0: i32, %arg1: i32) -> (i32, i32, i32) {
    %c0_i32 = arith.constant 0 : i32
    %c0_i32_0 = arith.constant 0 : i32
    %c0_i32_1 = arith.constant 0 : i32
    return %arg0, %c0_i32, %c0_i32_0 : i32, i32, i32
  }
  func.func @transform_6(%arg0: i32, %arg1: i32) -> (i32, i32, i32) {
    %c0_i32 = arith.constant 0 : i32
    %c0_i32_0 = arith.constant 0 : i32
    %c0_i32_1 = arith.constant 0 : i32
    return %arg0, %c0_i32, %c0_i32_0 : i32, i32, i32
  }
  func.func @transform_7(%arg0: i32, %arg1: i32) -> (i32, i32, i32) {
    %c0_i32 = arith.constant 0 : i32
    %c0_i32_0 = arith.constant 0 : i32
    %c0_i32_1 = arith.constant 0 : i32
    return %arg0, %c0_i32, %c0_i32_0 : i32, i32, i32
  }
  func.func @transform_8(%arg0: i32, %arg1: i32) -> (i32, i32, i32) {
    %c0_i32 = arith.constant 0 : i32
    %c0_i32_0 = arith.constant 0 : i32
    %c0_i32_1 = arith.constant 0 : i32
    return %arg0, %c0_i32, %c0_i32_0 : i32, i32, i32
  }
  func.func @transform_9(%arg0: i32, %arg1: i32) -> (i32, i32, i32) {
    %c0_i32 = arith.constant 0 : i32
    %c0_i32_0 = arith.constant 0 : i32
    %c0_i32_1 = arith.constant 0 : i32
    return %arg0, %c0_i32, %c0_i32_0 : i32, i32, i32
  }
  func.func @transform_10(%arg0: i32, %arg1: i32) -> (i32, i32, i32) {
    %c0_i32 = arith.constant 0 : i32
    %c0_i32_0 = arith.constant 0 : i32
    %c0_i32_1 = arith.constant 0 : i32
    return %arg0, %c0_i32, %c0_i32_0 : i32, i32, i32
  }
  func.func @transform_11(%arg0: i32, %arg1: i32) -> (i32, i32, i32) {
    %c0_i32 = arith.constant 0 : i32
    %c0_i32_0 = arith.constant 0 : i32
    %c0_i32_1 = arith.constant 0 : i32
    return %arg0, %c0_i32, %c0_i32_0 : i32, i32, i32
  }
  func.func @transform_12(%arg0: i32, %arg1: i32) -> (i32, i32, i32) {
    %c0_i32 = arith.constant 0 : i32
    %c0_i32_0 = arith.constant 0 : i32
    %c0_i32_1 = arith.constant 0 : i32
    return %arg0, %c0_i32, %c0_i32_0 : i32, i32, i32
  }
  func.func @transform_13(%arg0: i32, %arg1: i32) -> (i32, i32, i32, i32) {
    %c0_i32 = arith.constant 0 : i32
    %c0_i32_0 = arith.constant 0 : i32
    %c0_i32_1 = arith.constant 0 : i32
    return %arg0, %arg1, %c0_i32, %c0_i32_0 : i32, i32, i32, i32
  }
}

module attributes {stable_mosaic.version = 11 : i64} {
  func.func @_head_kernel(%arg0: i32, %arg1: memref<2x4x192xf32, #tpu.memory_space<vmem>>, %arg2: memref<1x192xf32, #tpu.memory_space<vmem>>, %arg3: memref<1x192xf32, #tpu.memory_space<vmem>>, %arg4: memref<192x5xf32, #tpu.memory_space<vmem>>, %arg5: memref<1x5xf32, #tpu.memory_space<vmem>>, %arg6: memref<2x5xf32, #tpu.memory_space<vmem>>) attributes {dimension_semantics = [#tpu.dimension_semantics<arbitrary>], iteration_bounds = array<i64: 1>, scalar_prefetch = 0 : i64, scratch_operands = 0 : i64, tpu.core_type = #tpu.core_type<tc>, window_params = [{pipeline_mode = #tpu.pipeline_mode<synchronous>, transform_indices = @transform_0, window_bounds = array<i64: 2, 4, 192>}, {pipeline_mode = #tpu.pipeline_mode<synchronous>, transform_indices = @transform_1, window_bounds = array<i64: 1, 192>}, {pipeline_mode = #tpu.pipeline_mode<synchronous>, transform_indices = @transform_2, window_bounds = array<i64: 1, 192>}, {pipeline_mode = #tpu.pipeline_mode<synchronous>, transform_indices = @transform_3, window_bounds = array<i64: 192, 5>}, {pipeline_mode = #tpu.pipeline_mode<synchronous>, transform_indices = @transform_4, window_bounds = array<i64: 1, 5>}, {pipeline_mode = #tpu.pipeline_mode<synchronous>, transform_indices = @transform_5, window_bounds = array<i64: 2, 5>}]} {
    %c0 = arith.constant 0 : index
    %c0_0 = arith.constant 0 : index
    %c0_1 = arith.constant 0 : index
    %0 = vector.load %arg1[%c0, %c0_0, %c0_1] : memref<2x4x192xf32, #tpu.memory_space<vmem>>, vector<2x4x192xf32>
    %c0_2 = arith.constant 0 : index
    %c0_3 = arith.constant 0 : index
    %1 = vector.load %arg2[%c0_2, %c0_3] : memref<1x192xf32, #tpu.memory_space<vmem>>, vector<1x192xf32>
    %c0_4 = arith.constant 0 : index
    %c0_5 = arith.constant 0 : index
    %2 = vector.load %arg3[%c0_4, %c0_5] : memref<1x192xf32, #tpu.memory_space<vmem>>, vector<1x192xf32>
    %cst = arith.constant dense<0.000000e+00> : vector<2x4xf32>
    %3 = vector.multi_reduction <add>, %0, %cst [2] : vector<2x4x192xf32> to vector<2x4xf32>
    %4 = vector.shape_cast %3 : vector<2x4xf32> to vector<2x4x1xf32>
    %cst_6 = arith.constant 1.920000e+02 : f32
    %5 = vector.broadcast %cst_6 : f32 to vector<2x4x1xf32>
    %6 = arith.divf %4, %5 : vector<2x4x1xf32>
    %7 = vector.broadcast %6 : vector<2x4x1xf32> to vector<2x4x192xf32>
    %8 = arith.subf %0, %7 : vector<2x4x192xf32>
    %9 = arith.mulf %8, %8 : vector<2x4x192xf32>
    %cst_7 = arith.constant dense<0.000000e+00> : vector<2x4xf32>
    %10 = vector.multi_reduction <add>, %9, %cst_7 [2] : vector<2x4x192xf32> to vector<2x4xf32>
    %11 = vector.shape_cast %10 : vector<2x4xf32> to vector<2x4x1xf32>
    %cst_8 = arith.constant 1.920000e+02 : f32
    %12 = vector.broadcast %cst_8 : f32 to vector<2x4x1xf32>
    %13 = arith.divf %11, %12 : vector<2x4x1xf32>
    %cst_9 = arith.constant 9.99999974E-6 : f32
    %14 = vector.broadcast %cst_9 : f32 to vector<2x4x1xf32>
    %15 = arith.addf %13, %14 : vector<2x4x1xf32>
    %16 = math.rsqrt %15 : vector<2x4x1xf32>
    %17 = vector.broadcast %16 : vector<2x4x1xf32> to vector<2x4x192xf32>
    %18 = arith.mulf %8, %17 : vector<2x4x192xf32>
    %19 = vector.shape_cast %1 : vector<1x192xf32> to vector<1x1x192xf32>
    %20 = vector.broadcast %19 : vector<1x1x192xf32> to vector<2x4x192xf32>
    %21 = arith.mulf %18, %20 : vector<2x4x192xf32>
    %22 = vector.shape_cast %2 : vector<1x192xf32> to vector<1x1x192xf32>
    %23 = vector.broadcast %22 : vector<1x1x192xf32> to vector<2x4x192xf32>
    %24 = arith.addf %21, %23 : vector<2x4x192xf32>
    %cst_10 = arith.constant dense<0.000000e+00> : vector<2x192xf32>
    %25 = vector.multi_reduction <add>, %24, %cst_10 [1] : vector<2x4x192xf32> to vector<2x192xf32>
    %cst_11 = arith.constant 4.000000e+00 : f32
    %26 = vector.broadcast %cst_11 : f32 to vector<2x192xf32>
    %27 = arith.divf %25, %26 : vector<2x192xf32>
    %c0_12 = arith.constant 0 : index
    %c0_13 = arith.constant 0 : index
    %28 = vector.load %arg4[%c0_12, %c0_13] : memref<192x5xf32, #tpu.memory_space<vmem>>, vector<192x5xf32>
    %cst_14 = arith.constant dense<0.000000e+00> : vector<2x5xf32>
    %29 = tpu.matmul %27, %28, %cst_14 {dimension_numbers = #tpu.dot_dimension_numbers<[1], [0], [0], [1], [0, 0, 1, 1], [], []>} : vector<2x192xf32>, vector<192x5xf32>, vector<2x5xf32> -> vector<2x5xf32>
    %c0_15 = arith.constant 0 : index
    %c0_16 = arith.constant 0 : index
    %30 = vector.load %arg5[%c0_15, %c0_16] : memref<1x5xf32, #tpu.memory_space<vmem>>, vector<1x5xf32>
    %31 = vector.broadcast %30 : vector<1x5xf32> to vector<2x5xf32>
    %32 = arith.addf %29, %31 : vector<2x5xf32>
    %c0_17 = arith.constant 0 : index
    %c0_18 = arith.constant 0 : index
    %33 = vector.load %arg6[%c0_17, %c0_18] : memref<2x5xf32, #tpu.memory_space<vmem>>, vector<2x5xf32>
    tpu.vector_store %arg6[%c0_17, %c0_18], %32 {strides = array<i32>} : memref<2x5xf32, #tpu.memory_space<vmem>>, vector<2x5xf32>,
    return
  }
  func.func @transform_0(%arg0: i32) -> (i32, i32, i32) {
    %c0_i32 = arith.constant 0 : i32
    %c0_i32_0 = arith.constant 0 : i32
    %c0_i32_1 = arith.constant 0 : i32
    %c0_i32_2 = arith.constant 0 : i32
    return %c0_i32, %c0_i32_0, %c0_i32_1 : i32, i32, i32
  }
  func.func @transform_1(%arg0: i32) -> (i32, i32) {
    %c0_i32 = arith.constant 0 : i32
    %c0_i32_0 = arith.constant 0 : i32
    %c0_i32_1 = arith.constant 0 : i32
    return %c0_i32, %c0_i32_0 : i32, i32
  }
  func.func @transform_2(%arg0: i32) -> (i32, i32) {
    %c0_i32 = arith.constant 0 : i32
    %c0_i32_0 = arith.constant 0 : i32
    %c0_i32_1 = arith.constant 0 : i32
    return %c0_i32, %c0_i32_0 : i32, i32
  }
  func.func @transform_3(%arg0: i32) -> (i32, i32) {
    %c0_i32 = arith.constant 0 : i32
    %c0_i32_0 = arith.constant 0 : i32
    %c0_i32_1 = arith.constant 0 : i32
    return %c0_i32, %c0_i32_0 : i32, i32
  }
  func.func @transform_4(%arg0: i32) -> (i32, i32) {
    %c0_i32 = arith.constant 0 : i32
    %c0_i32_0 = arith.constant 0 : i32
    %c0_i32_1 = arith.constant 0 : i32
    return %c0_i32, %c0_i32_0 : i32, i32
  }
  func.func @transform_5(%arg0: i32) -> (i32, i32) {
    %c0_i32 = arith.constant 0 : i32
    %c0_i32_0 = arith.constant 0 : i32
    %c0_i32_1 = arith.constant 0 : i32
    return %c0_i32, %c0_i32_0 : i32, i32
  }
}

</mosaic_0001>

<bundles_post_ra>
// kernel: mmf_mlpmixer_forward.8
= control target key start
LH: loop header
LB: loop body
LE: loop exit
PB: predicated region body
PF: predicated region fallthrough
CT: control target
= control target key end

     0   :  { %s630_s12 = smov 0   ;;  %s804_s0 = inlined_call_operand.vmem [shape: f32[2,8,1024], index: 0, kind: input, shape index: {}]   ;;  %s805_s1 = inlined_call_operand.vmem [shape: f32[2,1024,32], index: 1, kind: input, shape index: {}]   ;;  %s806_s2 = inlined_call_operand.vmem [shape: f32[2,1,32], index: 2, kind: input, shape index: {}]   ;;  %s807_s3 = inlined_call_operand.vmem [shape: f32[2,8,32], index: 3, kind: output, shape index: {}]  }
   0x1 LB: > { %s579_s13 = sadd.s32 4294967295, %s608_s12   ;;  %p583_p0 = scmp.ge.s32.totalorder %s608_s12, 1  ;;  %s608_s12 = sphi %s630_s12, %s13_s12  }
   0x2   : > { %p155_p1 = scmp.lt.s32.totalorder %s608_s12, 3 }
   0x4   : > { %p156_p2 = pnand %p583_p0, %p155_p1 }
   0x5   : > { %p186_p3 = scmp.lt.s32.totalorder (!%p156_p2), %s579_s13, 1 }
   0x6   : > { %159 = sbr.rel (%p156_p2) target bundleno = 217 (0xd9), region = 32 }
   0xb   : > { %s809_s13 = smov (!%p186_p3, %s579_s13), 1  ;;  %vm503_vm0 = vcmask 261120  }
   0xc   : > { %s592_s14 = sshll.u32 %s809_s13, 10  ;;  %s198_s20 = scalar_lea.vmem %s806_s2, %s809_s13 }
   0xd   : > { %s644_s17 = scalar_lea.vmem %s805_s1, %s592_s14  ;;  %s591_s21 = sshll.u32 %s809_s13, 6 }
   0xe   : > { %v258_v0 = vld [vmem:[%s644_s17 + $0x178] sm:$0xff]  ;;  %v257_v2 = vld [vmem:[%s644_s17 + $0x170] sm:$0xff]  ;;  %v256_v6 = vld [vmem:[%s644_s17 + $0x168] sm:$0xff]  ;;  %s758_s24 = scalar_lea.vmem %s804_s0, %s591_s21  ;;  %s588_s27 = sshll.u32 %s809_s13, 3 }
   0xf   : > { %v226_v1 = vld [vmem:[%s644_s17 + $0x78] sm:$0xff]  ;;  %383 = vmatpush.msra.mxu2 %v258_v0  ;;  %v225_v4 = vld [vmem:[%s644_s17 + $0x70] sm:$0xff]  ;;  %v224_v8 = vld [vmem:[%s644_s17 + $0x68] sm:$0xff]  ;;  %s202_s30 = scalar_lea.vmem %s807_s3, %s588_s27 }
  0x10   : > { %343 = vmatpush.msra.mxu0 %v226_v1  ;;  %v274_v3 = vld [vmem:[%s644_s17 + $0x1f8] sm:$0xff]  ;;  %v273_v7 = vld [vmem:[%s644_s17 + $0x1f0] sm:$0xff]  ;;  %v272_v10 = vld [vmem:[%s644_s17 + $0x1e8] sm:$0xff] }
  0x11   : > { %v242_v5 = vld [vmem:[%s644_s17 + $0xf8] sm:$0xff]  ;;  %403 = vmatpush.msra.mxu3 %v274_v3  ;;  %384 = vmatpush.msra.mxu2 %v257_v2  ;;  %v241_v9 = vld [vmem:[%s644_s17 + $0xf0] sm:$0xff]  ;;  %v255_v11 = vld [vmem:[%s644_s17 + $0x160] sm:$0xff] }
  0x12   : > { %363 = vmatpush.msra.mxu1 %v242_v5  ;;  %344 = vmatpush.msra.mxu0 %v225_v4  ;;  %v223_v12 = vld [vmem:[%s644_s17 + $0x60] sm:$0xff]  ;;  %v240_v13 = vld [vmem:[%s644_s17 + $0xe8] sm:$0xff]  ;;  %v254_v16 = vld [vmem:[%s644_s17 + $0x158] sm:$0xff] }
  0x13   : > { %404 = vmatpush.msra.mxu3 %v273_v7  ;;  %385 = vmatpush.msra.mxu2 %v256_v6  ;;  %v271_v14 = vld [vmem:[%s644_s17 + $0x1e0] sm:$0xff]  ;;  %v222_v17 = vld [vmem:[%s644_s17 + $0x58] sm:$0xff]  ;;  %v253_v20 = vld [vmem:[%s644_s17 + $0x150] sm:$0xff] }
  0x14   : > { %364 = vmatpush.msra.mxu1 %v241_v9  ;;  %345 = vmatpush.msra.mxu0 %v224_v8  ;;  %v239_v15 = vld [vmem:[%s644_s17 + $0xe0] sm:$0xff]  ;;  %v270_v18 = vld [vmem:[%s644_s17 + $0x1d8] sm:$0xff]  ;;  %v221_v21 = vld [vmem:[%s644_s17 + $0x50] sm:$0xff] }
  0x15   : > { %405 = vmatpush.msra.mxu3 %v272_v10  ;;  %386 = vmatpush.msra.mxu2 %v255_v11  ;;  %v238_v19 = vld [vmem:[%s644_s17 + $0xd8] sm:$0xff]  ;;  %v269_v22 = vld [vmem:[%s644_s17 + $0x1d0] sm:$0xff]  ;;  %v252_v24 = vld [vmem:[%s644_s17 + $0x148] sm:$0xff] }
  0x16   : > { %365 = vmatpush.msra.mxu1 %v240_v13  ;;  %346 = vmatpush.msra.mxu0 %v223_v12  ;;  %v237_v23 = vld [vmem:[%s644_s17 + $0xd0] sm:$0xff]  ;;  %v220_v25 = vld [vmem:[%s644_s17 + $0x48] sm:$0xff]  ;;  %v251_v28 = vld [vmem:[%s644_s17 + $0x140] sm:$0xff] }
  0x17   : > { %406 = vmatpush.msra.mxu3 %v271_v14  ;;  %387 = vmatpush.msra.mxu2 %v254_v16  ;;  %v268_v26 = vld [vmem:[%s644_s17 + $0x1c8] sm:$0xff]  ;;  %v219_v29 = vld [vmem:[%s644_s17 + $0x40] sm:$0xff]  ;;  %v250_v32 = vld [vmem:[%s644_s17 + $0x138] sm:$0xff] }
  0x18   : > { %366 = vmatpush.msra.mxu1 %v239_v15  ;;  %347 = vmatpush.msra.mxu0 %v222_v17  ;;  %v236_v27 = vld [vmem:[%s644_s17 + $0xc8] sm:$0xff]  ;;  %v267_v30 = vld [vmem:[%s644_s17 + $0x1c0] sm:$0xff]  ;;  %v218_v33 = vld [vmem:[%s644_s17 + $0x38] sm:$0xff] }
  0x19   : > { %407 = vmatpush.msra.mxu3 %v270_v18  ;;  %388 = vmatpush.msra.mxu2 %v253_v20  ;;  %v235_v31 = vld [vmem:[%s644_s17 + $0xc0] sm:$0xff]  ;;  %v266_v34 = vld [vmem:[%s644_s17 + $0x1b8] sm:$0xff]  ;;  %v249_v36 = vld [vmem:[%s644_s17 + $0x130] sm:$0xff] }
  0x1a   : > { %367 = vmatpush.msra.mxu1 %v238_v19  ;;  %348 = vmatpush.msra.mxu0 %v221_v21  ;;  %v234_v35 = vld [vmem:[%s644_s17 + $0xb8] sm:$0xff]  ;;  %v217_v37 = vld [vmem:[%s644_s17 + $0x30] sm:$0xff]  ;;  %v248_v40 = vld [vmem:[%s644_s17 + $0x128] sm:$0xff] }
  0x1b   : > { %408 = vmatpush.msra.mxu3 %v269_v22  ;;  %389 = vmatpush.msra.mxu2 %v252_v24  ;;  %v265_v38 = vld [vmem:[%s644_s17 + $0x1b0] sm:$0xff]  ;;  %v216_v41 = vld [vmem:[%s644_s17 + $0x28] sm:$0xff]  ;;  %v247_v44 = vld [vmem:[%s644_s17 + $0x120] sm:$0xff] }
  0x1c   : > { %368 = vmatpush.msra.mxu1 %v237_v23  ;;  %349 = vmatpush.msra.mxu0 %v220_v25  ;;  %v233_v39 = vld [vmem:[%s644_s17 + $0xb0] sm:$0xff]  ;;  %v264_v42 = vld [vmem:[%s644_s17 + $0x1a8] sm:$0xff]  ;;  %v215_v45 = vld [vmem:[%s644_s17 + $0x20] sm:$0xff] }
  0x1d   : > { %409 = vmatpush.msra.mxu3 %v268_v26  ;;  %390 = vmatpush.msra.mxu2 %v251_v28  ;;  %v232_v43 = vld [vmem:[%s644_s17 + $0xa8] sm:$0xff]  ;;  %v263_v46 = vld [vmem:[%s644_s17 + $0x1a0] sm:$0xff]  ;;  %v246_v48 = vld [vmem:[%s644_s17 + $0x118] sm:$0xff] }
  0x1e   : > { %369 = vmatpush.msra.mxu1 %v236_v27  ;;  %350 = vmatpush.msra.mxu0 %v219_v29  ;;  %v231_v47 = vld [vmem:[%s644_s17 + $0xa0] sm:$0xff]  ;;  %v214_v49 = vld [vmem:[%s644_s17 + $0x18] sm:$0xff]  ;;  %v245_v52 = vld [vmem:[%s644_s17 + $0x110] sm:$0xff] }
  0x1f   : > { %410 = vmatpush.msra.mxu3 %v267_v30  ;;  %391 = vmatpush.msra.mxu2 %v250_v32  ;;  %v262_v50 = vld [vmem:[%s644_s17 + $0x198] sm:$0xff]  ;;  %v213_v53 = vld [vmem:[%s644_s17 + $0x10] sm:$0xff]  ;;  %v244_v56 = vld [vmem:[%s644_s17 + $0x108] sm:$0xff] }
  0x20   : > { %370 = vmatpush.msra.mxu1 %v235_v31  ;;  %351 = vmatpush.msra.mxu0 %v218_v33  ;;  %v230_v51 = vld [vmem:[%s644_s17 + $0x98] sm:$0xff]  ;;  %v261_v54 = vld [vmem:[%s644_s17 + $0x190] sm:$0xff]  ;;  %v212_v57 = vld [vmem:[%s644_s17 + $0x8] sm:$0xff] }
  0x21   : > { %411 = vmatpush.msra.mxu3 %v266_v34  ;;  %392 = vmatpush.msra.mxu2 %v249_v36  ;;  %v229_v55 = vld [vmem:[%s644_s17 + $0x90] sm:$0xff]  ;;  %v260_v58 = vld [vmem:[%s644_s17 + $0x188] sm:$0xff]  ;;  %v243_v60 = vld [vmem:[%s644_s17 + $0x100] sm:$0xff] }
  0x22   : > { %371 = vmatpush.msra.mxu1 %v234_v35  ;;  %352 = vmatpush.msra.mxu0 %v217_v37  ;;  %v228_v59 = vld [vmem:[%s644_s17 + $0x88] sm:$0xff]  ;;  %v211_v61 = vld [vmem:[%s644_s17] sm:$0xff]  ;;  %v322_v62 = vld [vmem:[%s644_s17 + $0x378] sm:$0xff] }
  0x23   : > { %412 = vmatpush.msra.mxu3 %v265_v38  ;;  %393 = vmatpush.msra.mxu2 %v248_v40  ;;  %v259_v63 = vld [vmem:[%s644_s17 + $0x180] sm:$0xff]  ;;  %v290_v0 = vld [vmem:[%s644_s17 + $0x278] sm:$0xff]  ;;  %v321_v2 = vld [vmem:[%s644_s17 + $0x370] sm:$0xff] }
  0x24   : > { %372 = vmatpush.msra.mxu1 %v233_v39  ;;  %353 = vmatpush.msra.mxu0 %v216_v41  ;;  %v338_v1 = vld [vmem:[%s644_s17 + $0x3f8] sm:$0xff]  ;;  %v227_v3 = vld [vmem:[%s644_s17 + $0x80] sm:$0xff]  ;;  %v289_v4 = vld [vmem:[%s644_s17 + $0x270] sm:$0xff] }
  0x25   : > { %413 = vmatpush.msra.mxu3 %v264_v42  ;;  %394 = vmatpush.msra.mxu2 %v247_v44  ;;  %v306_v5 = vld [vmem:[%s644_s17 + $0x2f8] sm:$0xff]  ;;  %v320_v6 = vld [vmem:[%s644_s17 + $0x368] sm:$0xff]  ;;  %v337_v7 = vld [vmem:[%s644_s17 + $0x3f0] sm:$0xff] }
  0x26   : > { %373 = vmatpush.msra.mxu1 %v232_v43  ;;  %354 = vmatpush.msra.mxu0 %v215_v45  ;;  %v288_v8 = vld [vmem:[%s644_s17 + $0x268] sm:$0xff]  ;;  %v305_v9 = vld [vmem:[%s644_s17 + $0x2f0] sm:$0xff]  ;;  %v319_v10 = vld [vmem:[%s644_s17 + $0x360] sm:$0xff] }
  0x27   : > { %414 = vmatpush.msra.mxu3 %v263_v46  ;;  %395 = vmatpush.msra.mxu2 %v246_v48  ;;  %v336_v11 = vld [vmem:[%s644_s17 + $0x3e8] sm:$0xff]  ;;  %v287_v12 = vld [vmem:[%s644_s17 + $0x260] sm:$0xff]  ;;  %v318_v14 = vld [vmem:[%s644_s17 + $0x358] sm:$0xff] }
  0x28   : > { %374 = vmatpush.msra.mxu1 %v231_v47  ;;  %355 = vmatpush.msra.mxu0 %v214_v49  ;;  %v304_v13 = vld [vmem:[%s644_s17 + $0x2e8] sm:$0xff]  ;;  %v335_v15 = vld [vmem:[%s644_s17 + $0x3e0] sm:$0xff]  ;;  %v286_v16 = vld [vmem:[%s644_s17 + $0x258] sm:$0xff] }
  0x29   : > { %415 = vmatpush.msra.mxu3 %v262_v50  ;;  %396 = vmatpush.msra.mxu2 %v245_v52  ;;  %v303_v17 = vld [vmem:[%s644_s17 + $0x2e0] sm:$0xff]  ;;  %v317_v18 = vld [vmem:[%s644_s17 + $0x350] sm:$0xff]  ;;  %v334_v19 = vld [vmem:[%s644_s17 + $0x3d8] sm:$0xff] }
  0x2a   : > { %375 = vmatpush.msra.mxu1 %v230_v51  ;;  %356 = vmatpush.msra.mxu0 %v213_v53  ;;  %v285_v20 = vld [vmem:[%s644_s17 + $0x250] sm:$0xff]  ;;  %v302_v21 = vld [vmem:[%s644_s17 + $0x2d8] sm:$0xff]  ;;  %v316_v22 = vld [vmem:[%s644_s17 + $0x348] sm:$0xff] }
  0x2b   : > { %416 = vmatpush.msra.mxu3 %v261_v54  ;;  %397 = vmatpush.msra.mxu2 %v244_v56  ;;  %v333_v23 = vld [vmem:[%s644_s17 + $0x3d0] sm:$0xff]  ;;  %v284_v24 = vld [vmem:[%s644_s17 + $0x248] sm:$0xff]  ;;  %v315_v26 = vld [vmem:[%s644_s17 + $0x340] sm:$0xff] }
  0x2c   : > { %376 = vmatpush.msra.mxu1 %v229_v55  ;;  %357 = vmatpush.msra.mxu0 %v212_v57  ;;  %v301_v25 = vld [vmem:[%s644_s17 + $0x2d0] sm:$0xff]  ;;  %v332_v27 = vld [vmem:[%s644_s17 + $0x3c8] sm:$0xff]  ;;  %v283_v28 = vld [vmem:[%s644_s17 + $0x240] sm:$0xff] }
  0x2d   : > { %417 = vmatpush.msra.mxu3 %v260_v58  ;;  %398 = vmatpush.msra.mxu2 %v243_v60  ;;  %v300_v29 = vld [vmem:[%s644_s17 + $0x2c8] sm:$0xff]  ;;  %v314_v30 = vld [vmem:[%s644_s17 + $0x338] sm:$0xff]  ;;  %v331_v31 = vld [vmem:[%s644_s17 + $0x3c0] sm:$0xff] }
  0x2e   : > { %377 = vmatpush.msra.mxu1 %v228_v59  ;;  %358 = vmatpush.msra.mxu0 %v211_v61  ;;  %v282_v32 = vld [vmem:[%s644_s17 + $0x238] sm:$0xff]  ;;  %v299_v33 = vld [vmem:[%s644_s17 + $0x2c0] sm:$0xff]  ;;  %v313_v34 = vld [vmem:[%s644_s17 + $0x330] sm:$0xff] }
  0x2f   : > { %463 = vmatpush.msrb.mxu2 %v322_v62  ;;  %418 = vmatpush.msra.mxu3 %v259_v63  ;;  %v330_v35 = vld [vmem:[%s644_s17 + $0x3b8] sm:$0xff]  ;;  %v281_v36 = vld [vmem:[%s644_s17 + $0x230] sm:$0xff]  ;;  %v312_v38 = vld [vmem:[%s644_s17 + $0x328] sm:$0xff] }
  0x30   : > { %423 = vmatpush.msrb.mxu0 %v290_v0  ;;  %378 = vmatpush.msra.mxu1 %v227_v3  ;;  %v298_v37 = vld [vmem:[%s644_s17 + $0x2b8] sm:$0xff]  ;;  %v329_v39 = vld [vmem:[%s644_s17 + $0x3b0] sm:$0xff]  ;;  %v280_v40 = vld [vmem:[%s644_s17 + $0x228] sm:$0xff] }
  0x31   : > { %483 = vmatpush.msrb.mxu3 %v338_v1  ;;  %464 = vmatpush.msrb.mxu2 %v321_v2  ;;  %v297_v41 = vld [vmem:[%s644_s17 + $0x2b0] sm:$0xff]  ;;  %v311_v42 = vld [vmem:[%s644_s17 + $0x320] sm:$0xff]  ;;  %v328_v43 = vld [vmem:[%s644_s17 + $0x3a8] sm:$0xff] }
  0x32   : > { %424 = vmatpush.msrb.mxu0 %v289_v4  ;;  %443 = vmatpush.msrb.mxu1 %v306_v5  ;;  %v205_v44 = vld [vmem:[%s758_s24 + $0x10] sm:$0xff]  ;;  %v279_v45 = vld [vmem:[%s644_s17 + $0x220] sm:$0xff]  ;;  %v296_v46 = vld [vmem:[%s644_s17 + $0x2a8] sm:$0xff] }
  0x33   : > { %465 = vmatpush.msrb.mxu2 %v320_v6  ;;  %484 = vmatpush.msrb.mxu3 %v337_v7  ;;  %v310_v47 = vld [vmem:[%s644_s17 + $0x318] sm:$0xff]  ;;  %v327_v48 = vld [vmem:[%s644_s17 + $0x3a0] sm:$0xff]  ;;  %v309_v53 = vld [vmem:[%s644_s17 + $0x310] sm:$0xff] }
  0x34   : > { %425 = vmatpush.msrb.mxu0 %v288_v8  ;;  %444 = vmatpush.msrb.mxu1 %v305_v9  ;;  %v203_v49 = vld [vmem:[%s758_s24] sm:$0xff]  ;;  %v206_v50 = vld [vmem:[%s758_s24 + $0x18] sm:$0xff]  ;;  %v204_v55 = vld [vmem:[%s758_s24 + $0x8] sm:$0xff] }
  0x35   : > { %466 = vmatpush.msrb.mxu2 %v319_v10  ;;  %485 = vmatpush.msrb.mxu3 %v336_v11  ;;  %v278_v51 = vld [vmem:[%s644_s17 + $0x218] sm:$0xff]  ;;  %v295_v52 = vld [vmem:[%s644_s17 + $0x2a0] sm:$0xff]  ;;  %v277_v56 = vld [vmem:[%s644_s17 + $0x210] sm:$0xff] }
  0x36   : > { %426 = vmatpush.msrb.mxu0 %v287_v12  ;;  %445 = vmatpush.msrb.mxu1 %v304_v13  ;;  %v326_v54 = vld [vmem:[%s644_s17 + $0x398] sm:$0xff]  ;;  %v308_v58 = vld [vmem:[%s644_s17 + $0x308] sm:$0xff]  ;;  %v325_v59 = vld [vmem:[%s644_s17 + $0x390] sm:$0xff] }
  0x37   : > { %467 = vmatpush.msrb.mxu2 %v318_v14  ;;  %486 = vmatpush.msrb.mxu3 %v335_v15  ;;  %v294_v57 = vld [vmem:[%s644_s17 + $0x298] sm:$0xff]  ;;  %v276_v60 = vld [vmem:[%s644_s17 + $0x208] sm:$0xff]  ;;  %v293_v61 = vld [vmem:[%s644_s17 + $0x290] sm:$0xff] }
  0x38   : > { %427 = vmatpush.msrb.mxu0 %v286_v16  ;;  %446 = vmatpush.msrb.mxu1 %v303_v17  ;;  %v307_v62 = vld [vmem:[%s644_s17 + $0x300] sm:$0xff]  ;;  %v324_v63 = vld [vmem:[%s644_s17 + $0x388] sm:$0xff]  ;;  %v209_v0 = vld [vmem:[%s758_s24 + $0x30] sm:$0xff] }
  0x39   : > { %468 = vmatpush.msrb.mxu2 %v317_v18  ;;  %487 = vmatpush.msrb.mxu3 %v334_v19  ;;  %v275_v1 = vld [vmem:[%s644_s17 + $0x200] sm:$0xff]  ;;  %v292_v2 = vld [vmem:[%s644_s17 + $0x288] sm:$0xff]  ;;  %v210_v5 = vld [vmem:[%s758_s24 + $0x38] sm:$0xff] }
  0x3a   : > { %428 = vmatpush.msrb.mxu0 %v285_v20  ;;  %447 = vmatpush.msrb.mxu1 %v302_v21  ;;  %v323_v3 = vld [vmem:[%s644_s17 + $0x380] sm:$0xff]  ;;  %v208_v7 = vld [vmem:[%s758_s24 + $0x28] sm:$0xff] }
  0x3b   : > { %469 = vmatpush.msrb.mxu2 %v316_v22  ;;  %488 = vmatpush.msrb.mxu3 %v333_v23  ;;  %v207_v4 = vld [vmem:[%s758_s24 + $0x20] sm:$0xff] }
  0x3c   : > { %429 = vmatpush.msrb.mxu0 %v284_v24  ;;  %448 = vmatpush.msrb.mxu1 %v301_v25  ;;  %v291_v6 = vld [vmem:[%s644_s17 + $0x280] sm:$0xff] }
  0x3d   : > { %470 = vmatpush.msrb.mxu2 %v315_v26  ;;  %489 = vmatpush.msrb.mxu3 %v332_v27  ;;  %v601_v8 = vld [vmem:[%s198_s20] ss:$0 sm:$0xff] }
  0x3e   : > { %430 = vmatpush.msrb.mxu0 %v283_v28  ;;  %449 = vmatpush.msrb.mxu1 %v300_v29 }
  0x3f   : > { %471 = vmatpush.msrb.mxu2 %v314_v30  ;;  %490 = vmatpush.msrb.mxu3 %v331_v31 }
  0x40   : > { %431 = vmatpush.msrb.mxu0 %v282_v32  ;;  %450 = vmatpush.msrb.mxu1 %v299_v33 }
  0x41   : > { %472 = vmatpush.msrb.mxu2 %v313_v34  ;;  %491 = vmatpush.msrb.mxu3 %v330_v35 }
  0x42   : > { %432 = vmatpush.msrb.mxu0 %v281_v36  ;;  %451 = vmatpush.msrb.mxu1 %v298_v37 }
  0x43   : > { %473 = vmatpush.msrb.mxu2 %v312_v38  ;;  %492 = vmatpush.msrb.mxu3 %v329_v39 }
  0x44   : > { %433 = vmatpush.msrb.mxu0 %v280_v40  ;;  %452 = vmatpush.msrb.mxu1 %v297_v41 }
  0x45   : > { %474 = vmatpush.msrb.mxu2 %v311_v42  ;;  %493 = vmatpush.msrb.mxu3 %v328_v43 }
  0x46   : > { %399 = vmatmul.f32.vlgmr.msra.gmra.mxu2 %v205_v44  ;;  %434 = vmatpush.msrb.mxu0 %v279_v45 }
  0x47   : > { %453 = vmatpush.msrb.mxu1 %v296_v46  ;;  %475 = vmatpush.msrb.mxu2 %v310_v47 }
  0x48   : > { %494 = vmatpush.msrb.mxu3 %v327_v48  ;;  %359 = vmatmul.f32.vlgmr.msra.gmra.mxu0 %v203_v49 }
  0x49   : > { %419 = vmatmul.f32.vlgmr.msra.gmra.mxu3 %v206_v50  ;;  %435 = vmatpush.msrb.mxu0 %v278_v51 }
  0x4a   : > { %454 = vmatpush.msrb.mxu1 %v295_v52  ;;  %476 = vmatpush.msrb.mxu2 %v309_v53 }
  0x4b   : > { %495 = vmatpush.msrb.mxu3 %v326_v54  ;;  %379 = vmatmul.f32.vlgmr.msra.gmra.mxu1 %v204_v55 }
  0x4c   : > { %436 = vmatpush.msrb.mxu0 %v277_v56  ;;  %455 = vmatpush.msrb.mxu1 %v294_v57 }
  0x4d   : > { %477 = vmatpush.msrb.mxu2 %v308_v58  ;;  %496 = vmatpush.msrb.mxu3 %v325_v59 }
  0x4e   : > { %437 = vmatpush.msrb.mxu0 %v276_v60  ;;  %456 = vmatpush.msrb.mxu1 %v293_v61 }
  0x4f   : > { %478 = vmatpush.msrb.mxu2 %v307_v62  ;;  %497 = vmatpush.msrb.mxu3 %v324_v63 }
  0x50   : > { %479 = vmatmul.f32.vlgmr.msrb.gmra.mxu2 %v209_v0  ;;  %438 = vmatpush.msrb.mxu0 %v275_v1 }
  0x51   : > { %457 = vmatpush.msrb.mxu1 %v292_v2  ;;  %498 = vmatpush.msrb.mxu3 %v323_v3 }
  0x52   : > { %439 = vmatmul.f32.vlgmr.msrb.gmra.mxu0 %v207_v4  ;;  %499 = vmatmul.f32.vlgmr.msrb.gmra.mxu3 %v210_v5 }
  0x53   : > { %458 = vmatpush.msrb.mxu1 %v291_v6 }
  0x54   : > { %459 = vmatmul.f32.vlgmr.msrb.gmra.mxu1 %v208_v7 }
  0xc5   : > { %v360_v9 = vpop.f32.mrf.mxu0 }
  0xc6   : > { %v361_v10 = vadd.f32 %v601_v8, %v360_v9 }
  0xc8   : > { %v380_v11 = vpop.f32.mrf.mxu1 }
  0xc9   : > { %v381_v12 = vadd.f32 %v380_v11, %v361_v10  ;;  %v400_v13 = vpop.f32.mrf.mxu2 }
  0xcb   : > { %v401_v14 = vadd.f32 %v400_v13, %v381_v12 }
  0xcc   : > { %v420_v15 = vpop.f32.mrf.mxu3 }
  0xcd   : > { %v421_v16 = vadd.f32 %v420_v15, %v401_v14 }
  0xcf   : > { %v440_v17 = vpop.f32.mrf.mxu0 }
  0xd0   : > { %v441_v18 = vadd.f32 %v440_v17, %v421_v16 }
  0xd1   : > { %v460_v19 = vpop.f32.mrf.mxu1 }
  0xd2   : > { %v461_v20 = vadd.f32 %v460_v19, %v441_v18 }
  0xd3   : > { %v480_v21 = vpop.f32.mrf.mxu2 }
  0xd4   : > { %v481_v22 = vadd.f32 %v480_v21, %v461_v20 }
  0xd5   : > { %v500_v23 = vpop.f32.mrf.mxu3 }
  0xd6   : > { %v501_v24 = vadd.f32 %v500_v23, %v481_v22 }
  0xd8   : > { %504 = vst.msk [vmem:[%s202_s30] sm:$0xff] %vm503_vm0, %v501_v24 }
  0xd9 PF: > { %s13_s12 = sadd.s32 1, %s608_s12  }
  0xda   : > { %p10_p4 = scmp.ge.s32.totalorder %s13_s12, 4  }
  0xdc   :  { %12 = sbr.rel (!%p10_p4) target bundleno = 1 (0x1), region = 68 }

// kernel: mmf_mlpmixer_forward.9
= control target key start
LH: loop header
LB: loop body
LE: loop exit
PB: predicated region body
PF: predicated region fallthrough
CT: control target
= control target key end

     0   :  { %s1446_s25 = smov 0   ;;  %s1448_s26 = smov 0   ;;  %s1606_s0 = inlined_call_operand.vmem [shape: f32[2,2,4,32], index: 0, kind: input, shape index: {}]   ;;  %s1607_s1 = inlined_call_operand.vmem [shape: f32[2,1,32], index: 1, kind: input, shape index: {}]   ;;  %s1608_s2 = inlined_call_operand.vmem [shape: f32[2,1,32], index: 2, kind: input, shape index: {}]   ;;  %s1609_s3 = inlined_call_operand.vmem [shape: f32[2,16,4], index: 3, kind: input, shape index: {}]   ;;  %s1610_s4 = inlined_call_operand.vmem [shape: f32[2,16,1], index: 4, kind: input, shape index: {}]   ;;  %s1611_s5 = inlined_call_operand.vmem [shape: f32[2,4,16], index: 5, kind: input, shape index: {}]   ;;  %s1612_s6 = inlined_call_operand.vmem [shape: f32[2,4,1], index: 6, kind: input, shape index: {}]   ;;  %s1613_s7 = inlined_call_operand.vmem [shape: f32[2,1,32], index: 7, kind: input, shape index: {}]   ;;  %s1614_s8 = inlined_call_operand.vmem [shape: f32[2,1,32], index: 8, kind: input, shape index: {}]   ;;  %s1615_s9 = inlined_call_operand.vmem [shape: f32[2,32,64], index: 9, kind: input, shape index: {}]   ;;  %s1616_s10 = inlined_call_operand.vmem [shape: f32[2,1,64], index: 10, kind: input, shape index: {}]   ;;  %s1617_s11 = inlined_call_operand.vmem [shape: f32[2,64,32], index: 11, kind: input, shape index: {}]   ;;  %s1618_s12 = inlined_call_operand.vmem [shape: f32[2,1,32], index: 12, kind: input, shape index: {}]   ;;  %s1619_s13 = inlined_call_operand.vmem [shape: f32[2,2,4,32], index: 13, kind: output, shape index: {}]  }
   0x1   :  { %1621 = sst [smem:[#allocation2_spill]] %s1606_s0  ;;  %s1450_s27 = smov 0  }
   0x2   :  { %1622 = sst [smem:[#allocation3_spill]] %s1607_s1  ;;  %s1452_s28 = smov 0  }
   0x3   :  { %1623 = sst [smem:[#allocation4_spill]] %s1608_s2  ;;  %s1454_s29 = smov 0  }
   0x4 LB: > { %s32_s30 = sadd.s32 1, %s1364_s27  ;;  %s35_s14 = sadd.s32 1, %s1368_s28  ;;  %s1372_s29 = sphi %s1454_s29, %s23_s29   ;;  %s1368_s28 = sphi %s1452_s28, %s1631_s28   ;;  %s1364_s27 = sphi %s1450_s27, %s1630_s27   ;;  %s1360_s26 = sphi %s1448_s26, %s1629_s26   ;;  %s1356_s25 = sphi %s1446_s25, %s1628_s25  }
   0x5   : > { %p33_p0 = scmp.ge.s32.totalorder %s32_s30, 2  ;;  %p1241_p1 = scmp.ge.s32.totalorder %s1372_s29, 1 }
   0x6   : > { %p512_p2 = scmp.lt.s32.totalorder %s1372_s29, 5 }
   0x7   : > { %s1633_s30 = smov (%p33_p0, %s32_s30), 0  ;;  %s1635_s14 = smov (!%p33_p0, %s35_s14), %s1368_s28 }
   0x8   : > { %p513_p3 = pnand %p1241_p1, %p512_p2  ;;  %p37_p4 = scmp.ge.s32.totalorder %s1635_s14, 2 }
   0x9   : > { %p608_p5 = scmp.lt.s32.totalorder (!%p513_p3), %s1360_s26, 1  ;;  %p610_p6 = scmp.lt.s32.totalorder (!%p513_p3), %s1356_s25, 1 }
   0xa   : > { %s1637_s14 = smov (%p37_p4, %s1635_s14), 0  ;;  %516 = sbr.rel (%p513_p3) target bundleno = 1200 (0x4b0), region = 72 }
   0xb   : > { %s1624_s0 = sld [smem:[#allocation2_spill]] (!%p513_p3) }
   0xc   : > { %s1625_s1 = sld [smem:[#allocation3_spill]] (!%p513_p3) }
   0xd   : > { %s1626_s2 = sld [smem:[#allocation4_spill]] (!%p513_p3) }
   0xf   : > { %s1639_s26 = smov (!%p608_p5, %s1360_s26), 1  ;;  %s1641_s25 = smov (!%p610_p6, %s1356_s25), 1  ;;  %vm673_vm0 = vcmask 257024   ;;  %v1374_v2 = vmov 32.0   ;;  %v1375_v15 = vmov 0   ;;  %vm732_vm5 = vcmask 1043456  }
  0x10   : > { %s1242_s15 = sshll.u32 %s1639_s26, 1  ;;  %1322 = vrcp.f32 %v1374_v2  ;;  %s1267_s18 = sshll.u32 %s1639_s26, 4  ;;  %1313 = vset.pattern.permute.xlu1 %v1375_v15  ;;  %1314 = vset.pattern.permute.xlu2 %v1375_v15  ;;  %vm725_vm6 = vcmask 31744   ;;  %vm854_vm15 = vcmask 130048  }
  0x11   : > { %s1479_s16 = sadd.s32 %s1242_s15, %s1641_s25  ;;  %1315 = vset.pattern.permute.xlu0 %v1375_v15  ;;  %s626_s24 = scalar_lea.vmem %s1609_s3, %s1267_s18 }
  0x12   : > { %s1620_s17 = sshll.u32 %s1479_s16, 2  ;;  %s618_s23 = scalar_lea.vmem %s1625_s1, %s1639_s26  ;;  %v711_v32 = vld [vmem:[%s626_s24] sm:$0xff]  ;;  %v712_v33 = vld [vmem:[%s626_s24 + $0x8] sm:$0xff] }
  0x13   : > { %s615_s20 = scalar_lea.vmem %s1624_s0, %s1620_s17  ;;  %s621_s15 = scalar_lea.vmem %s1626_s2, %s1639_s26  ;;  %v1316_v26 = vld [vmem:[%s618_s23] ss:$0 sm:$0xff] }
  0x14   : > { %v1487_v0 = vld [vmem:[%s615_s20] sm:$0xf]  ;;  %s631_s17 = scalar_lea.vmem %s1610_s4, %s1267_s18  ;;  %s642_s24 = scalar_lea.vmem %s1613_s7, %s1639_s26 }
  0x15   : > { %v674_v1 = vsel %vm673_vm0, %v1487_v0, 0.0  ;;  %v714_v14 = vld [vmem:[%s631_s17 + $0x8] sm:$0xff]  ;;  %v713_v19 = vld [vmem:[%s631_s17] sm:$0xff]  ;;  %s1248_s17 = sshll.u32 %s1639_s26, 2  ;;  %s645_s25 = scalar_lea.vmem %s1614_s8, %s1639_s26 }
  0x16   : > { %675 = vadd.xlane.f32.xlu0 %v674_v1  ;;  %v1323_v3 = vpop.eup %1322  ;;  %722 = vperm.xlu1 %1313, %v714_v14   ;;  %v1317_v29 = vld [vmem:[%s621_s15] ss:$0 sm:$0xff]  ;;  %s639_s15 = scalar_lea.vmem %s1612_s6, %s1248_s17  ;;  %s635_s20 = scalar_lea.vmem %s1611_s5, %s1248_s17 }
  0x17   : > { %v678_v4 = vmul.f32 32.0, %v1323_v3  ;;  %vm682_vm1 = vweird.f32 %v1323_v3  ;;  %s653_s19 = scalar_lea.vmem %s1616_s10, %s1639_s26  ;;  %s1270_s17 = sshll.u32 %s1639_s26, 6 }
  0x19   : > { %v679_v5 = vsub.f32 1.0, %v678_v4 }
  0x1b   : > { %v680_v6 = vmul.f32 %v1323_v3, %v679_v5 }
  0x1d   : > { %v681_v7 = vadd.f32 %v1323_v3, %v680_v6 }
  0x1e   : > { %717 = vperm.xlu1 %1313, %v713_v19  }
  0x1f   : > { %v1491_v8 = vsel %vm682_vm1, %v1323_v3, %v681_v7 }
  0x88   : > { %v723_v34 = vpop.permute.xlu1 %722 }
  0x89   : > { %v676_v9 = vpop.xlane.xlu0 %675 }
  0x8a   : > { %v684_v10 = vmul.f32 %v1491_v8, %v676_v9 }
  0x8c   : > { %v685_v11 = vsub.f32 %v1487_v0, %v684_v10 }
  0x8e   : > { %v686_v12 = vmul.f32 %v685_v11, %v685_v11 }
  0x90   : > { %v687_v13 = vsel %vm673_vm0, %v686_v12, 0.0  ;;  %v718_v35 = vpop.permute.xlu1 %717 }
  0x91   : > { %688 = vadd.xlane.f32.xlu0 %v687_v13 }
 0x104   : > { %v689_v16 = vpop.xlane.xlu0 %688 }
 0x105   : > { %v690_v17 = vmul.f32 %v689_v16, %v1491_v8  ;;  %v848_v16 = vld [vmem:[%s639_s15] sm:$0xf] }
 0x106   : > { %851 = vperm.xlu2 %1314, %v848_v16  }
 0x107   : > { %v691_v18 = vadd.f32 1e-05, %v690_v17 }
 0x109   : > { %1324 = vrsqrt.f32 %v691_v18  ;;  %vm698_vm3 = vweird.f32 %v691_v18 }
 0x10f   : > { %v1325_v20 = vpop.eup %1324 }
 0x110   : > { %v693_v21 = vmul.f32 %v1325_v20, %v691_v18  ;;  %vm699_vm2 = vweird.f32 %v1325_v20 }
 0x111   : > { %vm700_vm4 = vmor %vm698_vm3, %vm699_vm2 }
 0x112   : > { %v694_v22 = vmul.f32 %v1325_v20, %v693_v21 }
 0x114   : > { %v695_v23 = vmul.f32 0.5, %v694_v22 }
 0x116   : > { %v696_v24 = vsub.f32 1.5, %v695_v23 }
 0x118   : > { %v697_v25 = vmul.f32 %v1325_v20, %v696_v24 }
 0x11a   : > { %v701_v27 = vsel %vm700_vm4, %v1325_v20, %v697_v25  ;;  %vm919_vm4 = vcmask 261120  }
 0x11b   : > { %v702_v28 = vmul.f32 %v701_v27, %v685_v11 }
 0x11d   : > { %v706_v30 = vmul.f32 %v1316_v26, %v702_v28 }
 0x11f   : > { %v710_v31 = vadd.f32 %v1317_v29, %v706_v30 }
 0x121   : > { %1256 = vmatpush.msk.msra.mxu0 %vm732_vm5, %v710_v31 }
 0x122   : > { %1257 = vmatmul.msk.f32.vlgmr.msra.gmra.mxu0 %vm725_vm6, %v711_v32 }
 0x12a   : > { %1258 = vmatmul.msk.f32.gmra.mxu0 %vm725_vm6, %v712_v33 }
 0x19f   : > { %v753_v36 = vpop.f32.mrf.mxu0 }
 0x1a0   : > { %v1512_v37 = vadd.f32 %v753_v36, %v718_v35 }
 0x1a2   : > { %v1515_v38 = vmul.f32 0.70710677, %v1512_v37 }
 0x1a4   : > { %v763_v39 = vmul.f32 %v1515_v38, %v1515_v38 }
 0x1a6   : > { %v764_v40 = vmin.f32 %v763_v39, 16.0 }
 0x1a7   : > { %v756_v41 = vpop.f32.mrf.mxu0 }
 0x1a8   : > { %v765_v42 = vmul.f32 2.1237322e-06, %v764_v40  ;;  %v1519_v43 = vadd.f32 %v756_v41, %v723_v34  ;;  %v776_v44 = vmul.f32 3.8918573e-05, %v764_v40 }
 0x1aa   : > { %v766_v45 = vadd.f32 0.00028619796, %v765_v42  ;;  %v1522_v46 = vmul.f32 0.70710677, %v1519_v43  ;;  %v777_v47 = vadd.f32 0.001143296, %v776_v44 }
 0x1ac   : > { %v803_v48 = vmul.f32 %v1522_v46, %v1522_v46  ;;  %v778_v49 = vmul.f32 %v777_v47, %v764_v40  ;;  %v767_v50 = vmul.f32 %v766_v45, %v764_v40 }
 0x1ae   : > { %v804_v51 = vmin.f32 %v803_v48, 16.0  ;;  %v779_v52 = vadd.f32 0.014752088, %v778_v49  ;;  %v768_v56 = vadd.f32 0.0036580483, %v767_v50 }
 0x1b0   : > { %v805_v53 = vmul.f32 2.1237322e-06, %v804_v51  ;;  %v816_v54 = vmul.f32 3.8918573e-05, %v804_v51  ;;  %v780_v55 = vmul.f32 %v779_v52, %v764_v40  ;;  %v769_v63 = vmul.f32 %v768_v56, %v764_v40 }
 0x1b2   : > { %v806_v57 = vadd.f32 0.00028619796, %v805_v53  ;;  %v817_v58 = vadd.f32 0.001143296, %v816_v54  ;;  %v781_v59 = vadd.f32 0.112945676, %v780_v55 }
 0x1b3   : > { %v770_v6 = vadd.f32 0.05243302, %v769_v63  ;;  %v760_v54 = vmul.f32 0.5, %v1519_v43  ;;  %v852_v43 = vpop.permute.xlu2 %851 }
 0x1b4   : > { %v807_v60 = vmul.f32 %v806_v57, %v804_v51  ;;  %v818_v61 = vmul.f32 %v817_v58, %v804_v51  ;;  %v782_v62 = vmul.f32 %v781_v59, %v764_v40  ;;  %v759_v57 = vmul.f32 0.5, %v1512_v37  ;;  %v847_v59 = vld [vmem:[%s635_s20] sm:$0xf]  ;;  %s1269_s20 = sshll.u32 %s1639_s26, 5 }
 0x1b5   : > { %v771_v12 = vmul.f32 %v770_v6, %v764_v40  ;;  %s650_s2 = scalar_lea.vmem %s1615_s9, %s1269_s20 }
 0x1b6   : > { %v819_v1 = vadd.f32 0.014752088, %v818_v61  ;;  %v808_v2 = vadd.f32 0.0036580483, %v807_v60  ;;  %v783_v3 = vadd.f32 0.4994258, %v782_v62 }
 0x1b7   : > { %v772_v17 = vadd.f32 0.18741608, %v771_v12  ;;  %v912_v6 = vld [vmem:[%s650_s2 + $0x8] sm:$0xff] }
 0x1b8   : > { %v820_v4 = vmul.f32 %v819_v1, %v804_v51  ;;  %v784_v5 = vmul.f32 %v783_v3, %v764_v40  ;;  %v809_v9 = vmul.f32 %v808_v2, %v804_v51 }
 0x1b9   : > { %v773_v22 = vmul.f32 %v772_v17, %v764_v40 }
 0x1ba   : > { %v821_v7 = vadd.f32 0.112945676, %v820_v4  ;;  %v785_v10 = vadd.f32 1.0, %v784_v5  ;;  %v810_v14 = vadd.f32 0.05243302, %v809_v9  ;;  %v913_v5 = vld [vmem:[%s650_s2 + $0x10] sm:$0xff] }
 0x1bb   : > { %v774_v29 = vadd.f32 1.1283791, %v773_v22 }
 0x1bc   : > { %v822_v11 = vmul.f32 %v821_v7, %v804_v51  ;;  %1326 = vrcp.f32 %v785_v10  ;;  %v811_v20 = vmul.f32 %v810_v14, %v804_v51  ;;  %v797_v25 = vand.u32 2147483648, %v785_v10  ;;  %v911_v7 = vld [vmem:[%s650_s2] sm:$0xff] }
 0x1bd   : > { %v795_v27 = vand.u32 2147483647, %v785_v10  ;;  %vm791_vm8 = vweird.f32 %v785_v10  ;;  %v775_v36 = vmul.f32 %v774_v29, %v1515_v38 }
 0x1be   : > { %v823_v13 = vadd.f32 0.4994258, %v822_v11  ;;  %v812_v23 = vadd.f32 0.18741608, %v811_v20  ;;  %v798_v33 = vor.u32 1.1754944e-38, %v797_v25 }
 0x1bf   : > { %vm796_vm10 = vcmp.eq.f32.partialorder %v795_v27, 8.507059e+37 }
 0x1c0   : > { %v824_v15 = vmul.f32 %v823_v13, %v804_v51  ;;  %v813_v30 = vmul.f32 %v812_v23, %v804_v51  ;;  %v1320_v23 = vld [vmem:[%s653_s19] ss:$0 sm:$0xff]  ;;  %s1627_s19 = sshll.u32 %s1479_s16, 2 }
 0x1c1   : > { %s669_s1 = scalar_lea.vmem %s1619_s13, %s1627_s19 }
 0x1c2   : > { %v825_v18 = vadd.f32 1.0, %v824_v15  ;;  %v1327_v19 = vpop.eup %1326  ;;  %v814_v41 = vadd.f32 1.1283791, %v813_v30 }
 0x1c3   : > { %v787_v21 = vmul.f32 %v1327_v19, %v785_v10  ;;  %vm792_vm7 = vweird.f32 %v1327_v19 }
 0x1c4   : > { %1328 = vrcp.f32 %v825_v18  ;;  %vm793_vm9 = vmor %vm791_vm8, %vm792_vm7  ;;  %v837_v39 = vand.u32 2147483648, %v825_v18  ;;  %v835_v44 = vand.u32 2147483647, %v825_v18  ;;  %vm831_vm12 = vweird.f32 %v825_v18 }
 0x1c5   : > { %v788_v24 = vsub.f32 1.0, %v787_v21  ;;  %v815_v49 = vmul.f32 %v814_v41, %v1522_v46  ;;  %v1319_v21 = vld [vmem:[%s645_s25] ss:$0 sm:$0xff]  ;;  %s658_s25 = scalar_lea.vmem %s1617_s11, %s1270_s17 }
 0x1c6   : > { %v838_v48 = vor.u32 1.1754944e-38, %v837_v39  ;;  %vm836_vm14 = vcmp.eq.f32.partialorder %v835_v44, 8.507059e+37  ;;  %v994_v29 = vld [vmem:[%s658_s25 + $0x38] sm:$0xff] }
 0x1c7   : > { %v789_v26 = vmul.f32 %v1327_v19, %v788_v24  ;;  %1011 = vmatpush.msra.mxu3 %v994_v29  ;;  %v990_v41 = vld [vmem:[%s658_s25 + $0x18] sm:$0xff] }
 0x1c9   : > { %v790_v32 = vadd.f32 %v1327_v19, %v789_v26 }
 0x1ca   : > { %v1329_v28 = vpop.eup %1328 }
 0x1cb   : > { %v827_v31 = vmul.f32 %v1329_v28, %v825_v18  ;;  %v794_v35 = vsel %vm793_vm9, %v1327_v19, %v790_v32  ;;  %vm832_vm11 = vweird.f32 %v1329_v28  ;;  %v1318_v18 = vld [vmem:[%s642_s24] ss:$0 sm:$0xff]  ;;  %v993_v32 = vld [vmem:[%s658_s25 + $0x30] sm:$0xff]  ;;  %vm999_vm9 = vcmask 523264  }
 0x1cc   : > { %v799_v40 = vsel %vm796_vm10, %v798_v33, %v794_v35  ;;  %vm833_vm13 = vmor %vm831_vm12, %vm832_vm11  ;;  %1012 = vmatpush.msra.mxu3 %v993_v32  ;;  %v992_v35 = vld [vmem:[%s658_s25 + $0x28] sm:$0xff] }
 0x1cd   : > { %v828_v34 = vsub.f32 1.0, %v827_v31  ;;  %v800_v47 = vmul.f32 %v799_v40, %v775_v36  ;;  %v991_v40 = vld [vmem:[%s658_s25 + $0x20] sm:$0xff] }
 0x1ce   : > { %1013 = vmatpush.msra.mxu3 %v992_v35 }
 0x1cf   : > { %v829_v42 = vmul.f32 %v1329_v28, %v828_v34  ;;  %v1259_v53 = vclamps-f32 %v800_v47, 1.0 }
 0x1d0   : > { %1014 = vmatpush.msra.mxu3 %v991_v40 }
 0x1d1   : > { %v830_v45 = vadd.f32 %v1329_v28, %v829_v42  ;;  %v843_v56 = vadd.f32 1.0, %v1259_v53 }
 0x1d2   : > { %1015 = vmatpush.msra.mxu3 %v990_v41 }
 0x1d3   : > { %v834_v50 = vsel %vm833_vm13, %v1329_v28, %v830_v45  ;;  %v845_v46 = vmul.f32 %v843_v56, %v759_v57  ;;  %v989_v45 = vld [vmem:[%s658_s25 + $0x10] sm:$0xff] }
 0x1d4   : > { %v839_v51 = vsel %vm836_vm14, %v838_v48, %v834_v50  ;;  %v988_v48 = vld [vmem:[%s658_s25 + $0x8] sm:$0xff]  ;;  %1016 = vmatpush.msra.mxu3 %v989_v45 }
 0x1d5   : > { %v840_v52 = vmul.f32 %v839_v51, %v815_v49  ;;  %v987_v51 = vld [vmem:[%s658_s25] sm:$0xff] }
 0x1d6   : > { %1017 = vmatpush.msra.mxu3 %v988_v48 }
 0x1d7   : > { %v1260_v38 = vclamps-f32 %v840_v52, 1.0 }
 0x1d8   : > { %1018 = vmatpush.msra.mxu3 %v987_v51 }
 0x1d9   : > { %v844_v55 = vadd.f32 1.0, %v1260_v38 }
 0x1db   : > { %v846_v58 = vmul.f32 %v844_v55, %v760_v54 }
 0x1dd   : > { %872 = vmatpush.msra.mxu1 %v846_v58 }
 0x1df   : > { %873 = vmatpush.msra.mxu1 %v845_v46 }
 0x1e0   : > { %1261 = vmatmul.msk.f32.vlgmr.msra.gmra.mxu1 %vm854_vm15, %v847_v59 }
 0x25d   : > { %v875_v60 = vpop.f32.mrf.mxu1 }
 0x25e   : > { %v876_v61 = vadd.f32 %v875_v60, %v852_v43 }
 0x260   : > { %v1542_v62 = vadd.f32 %v876_v61, %v1487_v0  ;;  %v914_v0 = vld [vmem:[%s650_s2 + $0x18] sm:$0xff]  ;;  %s661_s2 = scalar_lea.vmem %s1618_s12, %s1639_s26 }
 0x261   : > { %935 = vmatpush.msra.mxu2 %v914_v0 }
 0x262   : > { %v881_v37 = vsel %vm673_vm0, %v1542_v62, 0.0 }
 0x263   : > { %882 = vadd.xlane.f32.xlu2 %v881_v37  ;;  %936 = vmatpush.msra.mxu2 %v913_v5 }
 0x265   : > { %937 = vmatpush.msra.mxu2 %v912_v6 }
 0x267   : > { %938 = vmatpush.msra.mxu2 %v911_v7 }
 0x2d6   : > { %v883_v63 = vpop.xlane.xlu2 %882 }
 0x2d7   : > { %v884_v1 = vmul.f32 %v883_v63, %v1491_v8 }
 0x2d9   : > { %v885_v2 = vsub.f32 %v1542_v62, %v884_v1 }
 0x2db   : > { %v886_v3 = vmul.f32 %v885_v2, %v885_v2 }
 0x2dd   : > { %v887_v4 = vsel %vm673_vm0, %v886_v3, 0.0 }
 0x2de   : > { %888 = vadd.xlane.f32.xlu0 %v887_v4 }
 0x351   : > { %v889_v9 = vpop.xlane.xlu0 %888 }
 0x352   : > { %v890_v10 = vmul.f32 %v889_v9, %v1491_v8 }
 0x354   : > { %v891_v11 = vadd.f32 1e-05, %v890_v10 }
 0x356   : > { %1330 = vrsqrt.f32 %v891_v11  ;;  %vm898_vm2 = vweird.f32 %v891_v11 }
 0x35c   : > { %v1331_v12 = vpop.eup %1330 }
 0x35d   : > { %v893_v13 = vmul.f32 %v1331_v12, %v891_v11  ;;  %vm899_vm1 = vweird.f32 %v1331_v12  ;;  %v1321_v11 = vld [vmem:[%s661_s2] ss:$0 sm:$0xff] }
 0x35e   : > { %vm900_vm3 = vmor %vm898_vm2, %vm899_vm1 }
 0x35f   : > { %v894_v14 = vmul.f32 %v1331_v12, %v893_v13 }
 0x361   : > { %v895_v15 = vmul.f32 0.5, %v894_v14 }
 0x363   : > { %v896_v16 = vsub.f32 1.5, %v895_v15 }
 0x365   : > { %v897_v17 = vmul.f32 %v1331_v12, %v896_v16 }
 0x367   : > { %v901_v19 = vsel %vm900_vm3, %v1331_v12, %v897_v17 }
 0x368   : > { %v902_v20 = vmul.f32 %v901_v19, %v885_v2 }
 0x36a   : > { %v906_v22 = vmul.f32 %v1318_v18, %v902_v20 }
 0x36c   : > { %v910_v8 = vadd.f32 %v1319_v21, %v906_v22 }
 0x36e   : > { %1262 = vmatmul.msk.f32.vlgmr.msra.gmra.mxu2 %vm919_vm4, %v910_v8 }
 0x3f1   : > { %v940_v24 = vpop.f32.mrf.mxu2 }
 0x3f2   : > { %v941_v25 = vadd.f32 %v1320_v23, %v940_v24 }
 0x3f4   : > { %v944_v26 = vmul.f32 0.70710677, %v941_v25  ;;  %v943_v7 = vmul.f32 0.5, %v941_v25 }
 0x3f6   : > { %v945_v27 = vmul.f32 %v944_v26, %v944_v26 }
 0x3f8   : > { %v946_v28 = vmin.f32 %v945_v27, 16.0 }
 0x3fa   : > { %v947_v30 = vmul.f32 2.1237322e-06, %v946_v28  ;;  %v958_v31 = vmul.f32 3.8918573e-05, %v946_v28 }
 0x3fc   : > { %v948_v33 = vadd.f32 0.00028619796, %v947_v30  ;;  %v959_v34 = vadd.f32 0.001143296, %v958_v31 }
 0x3fe   : > { %v949_v36 = vmul.f32 %v948_v33, %v946_v28  ;;  %v960_v39 = vmul.f32 %v959_v34, %v946_v28 }
 0x400   : > { %v961_v42 = vadd.f32 0.014752088, %v960_v39  ;;  %v950_v44 = vadd.f32 0.0036580483, %v949_v36 }
 0x402   : > { %v962_v47 = vmul.f32 %v961_v42, %v946_v28  ;;  %v951_v50 = vmul.f32 %v950_v44, %v946_v28 }
 0x404   : > { %v963_v49 = vadd.f32 0.112945676, %v962_v47  ;;  %v952_v38 = vadd.f32 0.05243302, %v951_v50 }
 0x406   : > { %v964_v52 = vmul.f32 %v963_v49, %v946_v28  ;;  %v953_v56 = vmul.f32 %v952_v38, %v946_v28 }
 0x408   : > { %v965_v53 = vadd.f32 0.4994258, %v964_v52  ;;  %v954_v57 = vadd.f32 0.18741608, %v953_v56 }
 0x40a   : > { %v966_v54 = vmul.f32 %v965_v53, %v946_v28  ;;  %v955_v46 = vmul.f32 %v954_v57, %v946_v28 }
 0x40c   : > { %v967_v55 = vadd.f32 1.0, %v966_v54  ;;  %v956_v61 = vadd.f32 1.1283791, %v955_v46 }
 0x40e   : > { %1332 = vrcp.f32 %v967_v55  ;;  %v979_v60 = vand.u32 2147483648, %v967_v55  ;;  %v977_v63 = vand.u32 2147483647, %v967_v55  ;;  %vm973_vm6 = vweird.f32 %v967_v55 }
 0x40f   : > { %v957_v3 = vmul.f32 %v956_v61, %v944_v26 }
 0x410   : > { %v980_v2 = vor.u32 1.1754944e-38, %v979_v60  ;;  %vm978_vm8 = vcmp.eq.f32.partialorder %v977_v63, 8.507059e+37 }
 0x414   : > { %v1333_v58 = vpop.eup %1332 }
 0x415   : > { %v969_v59 = vmul.f32 %v1333_v58, %v967_v55  ;;  %vm974_vm5 = vweird.f32 %v1333_v58 }
 0x416   : > { %vm975_vm7 = vmor %vm973_vm6, %vm974_vm5 }
 0x417   : > { %v970_v43 = vsub.f32 1.0, %v969_v59 }
 0x419   : > { %v971_v37 = vmul.f32 %v1333_v58, %v970_v43 }
 0x41b   : > { %v972_v1 = vadd.f32 %v1333_v58, %v971_v37 }
 0x41d   : > { %v976_v4 = vsel %vm975_vm7, %v1333_v58, %v972_v1 }
 0x41e   : > { %v981_v0 = vsel %vm978_vm8, %v980_v2, %v976_v4 }
 0x41f   : > { %v982_v5 = vmul.f32 %v981_v0, %v957_v3 }
 0x421   : > { %v1263_v6 = vclamps-f32 %v982_v5, 1.0 }
 0x423   : > { %v985_v9 = vadd.f32 1.0, %v1263_v6 }
 0x425   : > { %v986_v10 = vmul.f32 %v985_v9, %v943_v7 }
 0x427   : > { %1264 = vmatmul.msk.f32.vlgmr.msra.gmra.mxu3 %vm999_vm9, %v986_v10 }
 0x4aa   : > { %v1020_v12 = vpop.f32.mrf.mxu3 }
 0x4ab   : > { %v1021_v13 = vadd.f32 %v1321_v11, %v1020_v12 }
 0x4ad   : > { %v1023_v14 = vadd.f32 %v1021_v13, %v1542_v62 }
 0x4af   : > { %1024 = vst.msk [vmem:[%s669_s1] sm:$0xf] %vm673_vm0, %v1023_v14 }
 0x4b0 PF: > { %s23_s29 = sadd.s32 1, %s1372_s29   ;;  %s1628_s25 = smov %s1364_s27 }
 0x4b1   : > { %p20_p7 = scmp.ge.s32.totalorder %s23_s29, 6   ;;  %s1629_s26 = smov %s1368_s28 }
 0x4b2   : > { %s1630_s27 = smov %s1633_s30  ;;  %s1631_s28 = smov %s1637_s14 }
 0x4b3   :  { %22 = sbr.rel (!%p20_p7) target bundleno = 4 (0x4), region = 138 }

// kernel: mmf_mlpmixer_forward.14
= control target key start
LH: loop header
LB: loop body
LE: loop exit
PB: predicated region body
PF: predicated region fallthrough
CT: control target
= control target key end

     0   :  { %s1447_s25 = smov 0   ;;  %s1449_s26 = smov 0   ;;  %s1612_s0 = inlined_call_operand.vmem [shape: f32[1,2,4,64], index: 0, kind: input, shape index: {}]   ;;  %s1613_s1 = inlined_call_operand.vmem [shape: f32[1,1,64], index: 1, kind: input, shape index: {}]   ;;  %s1614_s2 = inlined_call_operand.vmem [shape: f32[1,1,64], index: 2, kind: input, shape index: {}]   ;;  %s1615_s3 = inlined_call_operand.vmem [shape: f32[1,16,4], index: 3, kind: input, shape index: {}]   ;;  %s1616_s4 = inlined_call_operand.vmem [shape: f32[1,16,1], index: 4, kind: input, shape index: {}]   ;;  %s1617_s5 = inlined_call_operand.vmem [shape: f32[1,4,16], index: 5, kind: input, shape index: {}]   ;;  %s1618_s6 = inlined_call_operand.vmem [shape: f32[1,4,1], index: 6, kind: input, shape index: {}]   ;;  %s1619_s7 = inlined_call_operand.vmem [shape: f32[1,1,64], index: 7, kind: input, shape index: {}]   ;;  %s1620_s8 = inlined_call_operand.vmem [shape: f32[1,1,64], index: 8, kind: input, shape index: {}]   ;;  %s1621_s9 = inlined_call_operand.vmem [shape: f32[1,64,64], index: 9, kind: input, shape index: {}]   ;;  %s1622_s10 = inlined_call_operand.vmem [shape: f32[1,1,64], index: 10, kind: input, shape index: {}]   ;;  %s1623_s11 = inlined_call_operand.vmem [shape: f32[1,64,64], index: 11, kind: input, shape index: {}]   ;;  %s1624_s12 = inlined_call_operand.vmem [shape: f32[1,1,64], index: 12, kind: input, shape index: {}]   ;;  %s1625_s13 = inlined_call_operand.vmem [shape: f32[1,2,4,64], index: 13, kind: output, shape index: {}]  }
   0x1   :  { %s1451_s27 = smov 0  }
   0x2 LB: > { %s32_s28 = sadd.s32 1, %s1369_s26  ;;  %p1290_p0 = scmp.ge.s32.totalorder %s1373_s27, 1  ;;  %s1373_s27 = sphi %s1451_s27, %s23_s27   ;;  %s1369_s26 = sphi %s1449_s26, %s1627_s26   ;;  %s1365_s25 = sphi %s1447_s25, %s1626_s25  }
   0x3   : > { %p33_p1 = scmp.ge.s32.totalorder %s32_s28, 2  ;;  %p512_p2 = scmp.lt.s32.totalorder %s1373_s27, 3 }
   0x5   : > { %s1629_s28 = smov (%p33_p1, %s32_s28), 0  ;;  %p513_p3 = pnand %p1290_p0, %p512_p2 }
   0x6   : > { %p610_p4 = scmp.lt.s32.totalorder (!%p513_p3), %s1365_s25, 1 }
   0x7   : > { %516 = sbr.rel (%p513_p3) target bundleno = 1195 (0x4ab), region = 72 }
   0xc   : > { %s1631_s25 = smov (!%p610_p4, %s1365_s25), 1  ;;  %vm673_vm0 = vcmask 519168   ;;  %v1375_v2 = vmov 64.0   ;;  %v714_v14 = vld [vmem:[%s1616_s4 + $0x8] sm:$0xff]  ;;  %v1376_v15 = vmov 0   ;;  %v713_v19 = vld [vmem:[%s1616_s4] sm:$0xff] }
   0xd   : > { %s1291_s29 = sshll.u32 %s1631_s25, 2  ;;  %1339 = vrcp.f32 %v1375_v2  ;;  %1330 = vset.pattern.permute.xlu1 %v1376_v15  ;;  %1331 = vset.pattern.permute.xlu2 %v1376_v15  ;;  %v1333_v26 = vld [vmem:[%s1613_s1] ss:$0 sm:$0xff]  ;;  %vm732_vm5 = vcmask 1043456   ;;  %vm725_vm6 = vcmask 31744   ;;  %v712_v33 = vld [vmem:[%s1615_s3 + $0x8] sm:$0xff] }
   0xe   : > { %s615_s15 = scalar_lea.vmem %s1612_s0, %s1291_s29  ;;  %722 = vperm.xlu1 %1330, %v714_v14   ;;  %1332 = vset.pattern.permute.xlu0 %v1376_v15  ;;  %v1334_v29 = vld [vmem:[%s1614_s2] ss:$0 sm:$0xff]  ;;  %vm854_vm15 = vcmask 130048   ;;  %s669_s14 = scalar_lea.vmem %s1625_s13, %s1291_s29 }
   0xf   : > { %v1473_v0 = vld [vmem:[%s615_s15] sm:$0xf] }
  0x10   : > { %v674_v1 = vsel %vm673_vm0, %v1473_v0, 0.0  ;;  %v711_v32 = vld [vmem:[%s1615_s3] sm:$0xff] }
  0x11   : > { %675 = vadd.xlane.f32.xlu0 %v674_v1 }
  0x13   : > { %v1340_v3 = vpop.eup %1339 }
  0x14   : > { %v678_v4 = vmul.f32 64.0, %v1340_v3  ;;  %vm682_vm1 = vweird.f32 %v1340_v3 }
  0x16   : > { %v679_v5 = vsub.f32 1.0, %v678_v4  ;;  %717 = vperm.xlu1 %1330, %v713_v19  }
  0x18   : > { %v680_v6 = vmul.f32 %v1340_v3, %v679_v5 }
  0x1a   : > { %v681_v7 = vadd.f32 %v1340_v3, %v680_v6 }
  0x1c   : > { %v1477_v8 = vsel %vm682_vm1, %v1340_v3, %v681_v7 }
  0x80   : > { %v723_v34 = vpop.permute.xlu1 %722 }
  0x84   : > { %v676_v9 = vpop.xlane.xlu0 %675 }
  0x85   : > { %v684_v10 = vmul.f32 %v1477_v8, %v676_v9 }
  0x87   : > { %v685_v11 = vsub.f32 %v1473_v0, %v684_v10 }
  0x88   : > { %v718_v35 = vpop.permute.xlu1 %717 }
  0x89   : > { %v686_v12 = vmul.f32 %v685_v11, %v685_v11 }
  0x8b   : > { %v687_v13 = vsel %vm673_vm0, %v686_v12, 0.0 }
  0x8c   : > { %688 = vadd.xlane.f32.xlu0 %v687_v13 }
  0xff   : > { %v689_v16 = vpop.xlane.xlu0 %688 }
 0x100   : > { %v690_v17 = vmul.f32 %v689_v16, %v1477_v8  ;;  %v848_v16 = vld [vmem:[%s1618_s6] sm:$0xf] }
 0x101   : > { %851 = vperm.xlu2 %1331, %v848_v16  }
 0x102   : > { %v691_v18 = vadd.f32 1e-05, %v690_v17 }
 0x104   : > { %1341 = vrsqrt.f32 %v691_v18  ;;  %vm698_vm3 = vweird.f32 %v691_v18 }
 0x10a   : > { %v1342_v20 = vpop.eup %1341 }
 0x10b   : > { %v693_v21 = vmul.f32 %v1342_v20, %v691_v18  ;;  %vm699_vm2 = vweird.f32 %v1342_v20 }
 0x10c   : > { %vm700_vm4 = vmor %vm698_vm3, %vm699_vm2 }
 0x10d   : > { %v694_v22 = vmul.f32 %v1342_v20, %v693_v21 }
 0x10f   : > { %v695_v23 = vmul.f32 0.5, %v694_v22 }
 0x111   : > { %v696_v24 = vsub.f32 1.5, %v695_v23 }
 0x113   : > { %v697_v25 = vmul.f32 %v1342_v20, %v696_v24 }
 0x115   : > { %v701_v27 = vsel %vm700_vm4, %v1342_v20, %v697_v25  ;;  %vm923_vm4 = vcmask 523264  }
 0x116   : > { %v702_v28 = vmul.f32 %v701_v27, %v685_v11 }
 0x118   : > { %v706_v30 = vmul.f32 %v1333_v26, %v702_v28 }
 0x11a   : > { %v710_v31 = vadd.f32 %v1334_v29, %v706_v30 }
 0x11c   : > { %1293 = vmatpush.msk.msra.mxu0 %vm732_vm5, %v710_v31 }
 0x11d   : > { %1294 = vmatmul.msk.f32.vlgmr.msra.gmra.mxu0 %vm725_vm6, %v711_v32 }
 0x125   : > { %1295 = vmatmul.msk.f32.gmra.mxu0 %vm725_vm6, %v712_v33 }
 0x19a   : > { %v753_v36 = vpop.f32.mrf.mxu0 }
 0x19b   : > { %v1501_v37 = vadd.f32 %v753_v36, %v718_v35 }
 0x19d   : > { %v1504_v38 = vmul.f32 0.70710677, %v1501_v37 }
 0x19f   : > { %v763_v39 = vmul.f32 %v1504_v38, %v1504_v38 }
 0x1a1   : > { %v764_v40 = vmin.f32 %v763_v39, 16.0 }
 0x1a2   : > { %v756_v41 = vpop.f32.mrf.mxu0 }
 0x1a3   : > { %v765_v42 = vmul.f32 2.1237322e-06, %v764_v40  ;;  %v1508_v43 = vadd.f32 %v756_v41, %v723_v34  ;;  %v776_v44 = vmul.f32 3.8918573e-05, %v764_v40 }
 0x1a5   : > { %v766_v45 = vadd.f32 0.00028619796, %v765_v42  ;;  %v1511_v46 = vmul.f32 0.70710677, %v1508_v43  ;;  %v777_v47 = vadd.f32 0.001143296, %v776_v44 }
 0x1a7   : > { %v803_v48 = vmul.f32 %v1511_v46, %v1511_v46  ;;  %v778_v49 = vmul.f32 %v777_v47, %v764_v40  ;;  %v767_v50 = vmul.f32 %v766_v45, %v764_v40 }
 0x1a9   : > { %v804_v51 = vmin.f32 %v803_v48, 16.0  ;;  %v779_v52 = vadd.f32 0.014752088, %v778_v49  ;;  %v768_v56 = vadd.f32 0.0036580483, %v767_v50 }
 0x1ab   : > { %v805_v53 = vmul.f32 2.1237322e-06, %v804_v51  ;;  %v816_v54 = vmul.f32 3.8918573e-05, %v804_v51  ;;  %v780_v55 = vmul.f32 %v779_v52, %v764_v40  ;;  %v769_v63 = vmul.f32 %v768_v56, %v764_v40 }
 0x1ad   : > { %v806_v57 = vadd.f32 0.00028619796, %v805_v53  ;;  %v817_v58 = vadd.f32 0.001143296, %v816_v54  ;;  %v781_v59 = vadd.f32 0.112945676, %v780_v55 }
 0x1ae   : > { %v770_v6 = vadd.f32 0.05243302, %v769_v63 }
 0x1af   : > { %v807_v60 = vmul.f32 %v806_v57, %v804_v51  ;;  %v818_v61 = vmul.f32 %v817_v58, %v804_v51  ;;  %v782_v62 = vmul.f32 %v781_v59, %v764_v40  ;;  %v759_v57 = vmul.f32 0.5, %v1501_v37 }
 0x1b0   : > { %v771_v12 = vmul.f32 %v770_v6, %v764_v40  ;;  %v916_v6 = vld [vmem:[%s1621_s9 + $0x28] sm:$0xff] }
 0x1b1   : > { %v819_v1 = vadd.f32 0.014752088, %v818_v61  ;;  %v808_v2 = vadd.f32 0.0036580483, %v807_v60  ;;  %v783_v3 = vadd.f32 0.4994258, %v782_v62 }
 0x1b2   : > { %v772_v17 = vadd.f32 0.18741608, %v771_v12  ;;  %v847_v60 = vld [vmem:[%s1617_s5] sm:$0xf] }
 0x1b3   : > { %v820_v4 = vmul.f32 %v819_v1, %v804_v51  ;;  %v784_v5 = vmul.f32 %v783_v3, %v764_v40  ;;  %v809_v9 = vmul.f32 %v808_v2, %v804_v51  ;;  %v911_v12 = vld [vmem:[%s1621_s9] sm:$0xff] }
 0x1b4   : > { %v773_v22 = vmul.f32 %v772_v17, %v764_v40 }
 0x1b5   : > { %v821_v7 = vadd.f32 0.112945676, %v820_v4  ;;  %v785_v10 = vadd.f32 1.0, %v784_v5  ;;  %v810_v14 = vadd.f32 0.05243302, %v809_v9  ;;  %v918_v5 = vld [vmem:[%s1621_s9 + $0x38] sm:$0xff] }
 0x1b6   : > { %v774_v29 = vadd.f32 1.1283791, %v773_v22  ;;  %935 = vmatpush.msra.mxu2 %v918_v5  ;;  %v914_v9 = vld [vmem:[%s1621_s9 + $0x18] sm:$0xff]  ;;  %v1335_v22 = vld [vmem:[%s1619_s7] ss:$0 sm:$0xff] }
 0x1b7   : > { %v822_v11 = vmul.f32 %v821_v7, %v804_v51  ;;  %1343 = vrcp.f32 %v785_v10  ;;  %v811_v20 = vmul.f32 %v810_v14, %v804_v51  ;;  %v797_v25 = vand.u32 2147483648, %v785_v10  ;;  %v915_v7 = vld [vmem:[%s1621_s9 + $0x20] sm:$0xff] }
 0x1b8   : > { %v795_v27 = vand.u32 2147483647, %v785_v10  ;;  %vm791_vm8 = vweird.f32 %v785_v10  ;;  %v775_v36 = vmul.f32 %v774_v29, %v1504_v38  ;;  %v760_v38 = vmul.f32 0.5, %v1508_v43 }
 0x1b9   : > { %v823_v13 = vadd.f32 0.4994258, %v822_v11  ;;  %v812_v23 = vadd.f32 0.18741608, %v811_v20  ;;  %v798_v33 = vor.u32 1.1754944e-38, %v797_v25  ;;  %v912_v11 = vld [vmem:[%s1621_s9 + $0x8] sm:$0xff] }
 0x1ba   : > { %vm796_vm10 = vcmp.eq.f32.partialorder %v795_v27, 8.507059e+37  ;;  %v1337_v27 = vld [vmem:[%s1622_s10] ss:$0 sm:$0xff] }
 0x1bb   : > { %v824_v15 = vmul.f32 %v823_v13, %v804_v51  ;;  %v813_v30 = vmul.f32 %v812_v23, %v804_v51 }
 0x1bd   : > { %v825_v18 = vadd.f32 1.0, %v824_v15  ;;  %v1344_v19 = vpop.eup %1343  ;;  %v814_v41 = vadd.f32 1.1283791, %v813_v30 }
 0x1be   : > { %v787_v21 = vmul.f32 %v1344_v19, %v785_v10  ;;  %vm792_vm7 = vweird.f32 %v1344_v19  ;;  %v913_v10 = vld [vmem:[%s1621_s9 + $0x10] sm:$0xff] }
 0x1bf   : > { %1345 = vrcp.f32 %v825_v18  ;;  %vm793_vm9 = vmor %vm791_vm8, %vm792_vm7  ;;  %v837_v39 = vand.u32 2147483648, %v825_v18  ;;  %v835_v44 = vand.u32 2147483647, %v825_v18  ;;  %vm831_vm12 = vweird.f32 %v825_v18 }
 0x1c0   : > { %v788_v24 = vsub.f32 1.0, %v787_v21  ;;  %v815_v49 = vmul.f32 %v814_v41, %v1511_v46  ;;  %v852_v46 = vpop.permute.xlu2 %851  ;;  %v996_v41 = vld [vmem:[%s1623_s11 + $0x28] sm:$0xff] }
 0x1c1   : > { %v838_v48 = vor.u32 1.1754944e-38, %v837_v39  ;;  %vm836_vm14 = vcmp.eq.f32.partialorder %v835_v44, 8.507059e+37 }
 0x1c2   : > { %v789_v26 = vmul.f32 %v1344_v19, %v788_v24 }
 0x1c4   : > { %v790_v32 = vadd.f32 %v1344_v19, %v789_v26 }
 0x1c5   : > { %v1346_v28 = vpop.eup %1345 }
 0x1c6   : > { %v827_v31 = vmul.f32 %v1346_v28, %v825_v18  ;;  %v794_v35 = vsel %vm793_vm9, %v1344_v19, %v790_v32  ;;  %vm832_vm11 = vweird.f32 %v1346_v28 }
 0x1c7   : > { %v799_v40 = vsel %vm796_vm10, %v798_v33, %v794_v35  ;;  %vm833_vm13 = vmor %vm831_vm12, %vm832_vm11  ;;  %v998_v33 = vld [vmem:[%s1623_s11 + $0x38] sm:$0xff] }
 0x1c8   : > { %v828_v34 = vsub.f32 1.0, %v827_v31  ;;  %v800_v47 = vmul.f32 %v799_v40, %v775_v36  ;;  %1014 = vmatpush.msra.mxu3 %v998_v33  ;;  %v997_v36 = vld [vmem:[%s1623_s11 + $0x30] sm:$0xff] }
 0x1ca   : > { %v829_v42 = vmul.f32 %v1346_v28, %v828_v34  ;;  %v1296_v53 = vclamps-f32 %v800_v47, 1.0  ;;  %1015 = vmatpush.msra.mxu3 %v997_v36  ;;  %v994_v47 = vld [vmem:[%s1623_s11 + $0x18] sm:$0xff] }
 0x1cc   : > { %v830_v45 = vadd.f32 %v1346_v28, %v829_v42  ;;  %v843_v56 = vadd.f32 1.0, %v1296_v53  ;;  %1016 = vmatpush.msra.mxu3 %v996_v41 }
 0x1ce   : > { %v834_v50 = vsel %vm833_vm13, %v1346_v28, %v830_v45  ;;  %v845_v59 = vmul.f32 %v843_v56, %v759_v57  ;;  %v995_v45 = vld [vmem:[%s1623_s11 + $0x20] sm:$0xff] }
 0x1cf   : > { %v839_v51 = vsel %vm836_vm14, %v838_v48, %v834_v50  ;;  %1017 = vmatpush.msra.mxu3 %v995_v45  ;;  %v993_v50 = vld [vmem:[%s1623_s11 + $0x10] sm:$0xff] }
 0x1d0   : > { %v840_v52 = vmul.f32 %v839_v51, %v815_v49 }
 0x1d1   : > { %1018 = vmatpush.msra.mxu3 %v994_v47 }
 0x1d2   : > { %v1297_v54 = vclamps-f32 %v840_v52, 1.0  ;;  %v992_v52 = vld [vmem:[%s1623_s11 + $0x8] sm:$0xff] }
 0x1d3   : > { %1019 = vmatpush.msra.mxu3 %v993_v50 }
 0x1d4   : > { %v844_v55 = vadd.f32 1.0, %v1297_v54 }
 0x1d5   : > { %1020 = vmatpush.msra.mxu3 %v992_v52 }
 0x1d6   : > { %v846_v58 = vmul.f32 %v844_v55, %v760_v38  ;;  %v991_v38 = vld [vmem:[%s1623_s11] sm:$0xff] }
 0x1d7   : > { %1021 = vmatpush.msra.mxu3 %v991_v38 }
 0x1d8   : > { %872 = vmatpush.msra.mxu1 %v846_v58 }
 0x1da   : > { %873 = vmatpush.msra.mxu1 %v845_v59 }
 0x1db   : > { %1298 = vmatmul.msk.f32.vlgmr.msra.gmra.mxu1 %vm854_vm15, %v847_v60 }
 0x258   : > { %v875_v61 = vpop.f32.mrf.mxu1 }
 0x259   : > { %v876_v62 = vadd.f32 %v875_v61, %v852_v46 }
 0x25b   : > { %v1526_v63 = vadd.f32 %v876_v62, %v1473_v0  ;;  %v917_v0 = vld [vmem:[%s1621_s9 + $0x30] sm:$0xff] }
 0x25c   : > { %936 = vmatpush.msra.mxu2 %v917_v0 }
 0x25d   : > { %v881_v43 = vsel %vm673_vm0, %v1526_v63, 0.0 }
 0x25e   : > { %882 = vadd.xlane.f32.xlu2 %v881_v43  ;;  %937 = vmatpush.msra.mxu2 %v916_v6 }
 0x260   : > { %938 = vmatpush.msra.mxu2 %v915_v7 }
 0x262   : > { %939 = vmatpush.msra.mxu2 %v914_v9 }
 0x264   : > { %940 = vmatpush.msra.mxu2 %v913_v10 }
 0x266   : > { %941 = vmatpush.msra.mxu2 %v912_v11 }
 0x268   : > { %942 = vmatpush.msra.mxu2 %v911_v12 }
 0x2d1   : > { %v883_v37 = vpop.xlane.xlu2 %882 }
 0x2d2   : > { %v884_v1 = vmul.f32 %v883_v37, %v1477_v8 }
 0x2d4   : > { %v885_v2 = vsub.f32 %v1526_v63, %v884_v1 }
 0x2d6   : > { %v886_v3 = vmul.f32 %v885_v2, %v885_v2 }
 0x2d8   : > { %v887_v4 = vsel %vm673_vm0, %v886_v3, 0.0 }
 0x2d9   : > { %888 = vadd.xlane.f32.xlu0 %v887_v4 }
 0x34c   : > { %v889_v13 = vpop.xlane.xlu0 %888 }
 0x34d   : > { %v890_v14 = vmul.f32 %v889_v13, %v1477_v8  ;;  %v1336_v8 = vld [vmem:[%s1620_s8] ss:$0 sm:$0xff] }
 0x34f   : > { %v891_v15 = vadd.f32 1e-05, %v890_v14 }
 0x351   : > { %1347 = vrsqrt.f32 %v891_v15  ;;  %vm898_vm2 = vweird.f32 %v891_v15 }
 0x357   : > { %v1348_v16 = vpop.eup %1347 }
 0x358   : > { %v893_v17 = vmul.f32 %v1348_v16, %v891_v15  ;;  %vm899_vm1 = vweird.f32 %v1348_v16  ;;  %v1338_v15 = vld [vmem:[%s1624_s12] ss:$0 sm:$0xff] }
 0x359   : > { %vm900_vm3 = vmor %vm898_vm2, %vm899_vm1 }
 0x35a   : > { %v894_v18 = vmul.f32 %v1348_v16, %v893_v17 }
 0x35c   : > { %v895_v19 = vmul.f32 0.5, %v894_v18 }
 0x35e   : > { %v896_v20 = vsub.f32 1.5, %v895_v19 }
 0x360   : > { %v897_v21 = vmul.f32 %v1348_v16, %v896_v20 }
 0x362   : > { %v901_v23 = vsel %vm900_vm3, %v1348_v16, %v897_v21 }
 0x363   : > { %v902_v24 = vmul.f32 %v901_v23, %v885_v2 }
 0x365   : > { %v906_v25 = vmul.f32 %v1335_v22, %v902_v24 }
 0x367   : > { %v910_v26 = vadd.f32 %v1336_v8, %v906_v25 }
 0x369   : > { %1299 = vmatmul.msk.f32.vlgmr.msra.gmra.mxu2 %vm923_vm4, %v910_v26 }
 0x3ec   : > { %v944_v28 = vpop.f32.mrf.mxu2 }
 0x3ed   : > { %v945_v29 = vadd.f32 %v1337_v27, %v944_v28 }
 0x3ef   : > { %v948_v30 = vmul.f32 0.70710677, %v945_v29  ;;  %v947_v12 = vmul.f32 0.5, %v945_v29 }
 0x3f1   : > { %v949_v31 = vmul.f32 %v948_v30, %v948_v30 }
 0x3f3   : > { %v950_v32 = vmin.f32 %v949_v31, 16.0 }
 0x3f5   : > { %v951_v34 = vmul.f32 2.1237322e-06, %v950_v32  ;;  %v962_v35 = vmul.f32 3.8918573e-05, %v950_v32 }
 0x3f7   : > { %v952_v39 = vadd.f32 0.00028619796, %v951_v34  ;;  %v963_v40 = vadd.f32 0.001143296, %v962_v35 }
 0x3f9   : > { %v953_v42 = vmul.f32 %v952_v39, %v950_v32  ;;  %v964_v44 = vmul.f32 %v963_v40, %v950_v32 }
 0x3fb   : > { %v965_v48 = vadd.f32 0.014752088, %v964_v44  ;;  %v954_v49 = vadd.f32 0.0036580483, %v953_v42 }
 0x3fd   : > { %v966_v51 = vmul.f32 %v965_v48, %v950_v32  ;;  %v955_v54 = vmul.f32 %v954_v49, %v950_v32 }
 0x3ff   : > { %v967_v53 = vadd.f32 0.112945676, %v966_v51  ;;  %v956_v57 = vadd.f32 0.05243302, %v955_v54 }
 0x401   : > { %v968_v55 = vmul.f32 %v967_v53, %v950_v32  ;;  %v957_v60 = vmul.f32 %v956_v57, %v950_v32 }
 0x403   : > { %v969_v56 = vadd.f32 0.4994258, %v968_v55  ;;  %v958_v46 = vadd.f32 0.18741608, %v957_v60 }
 0x405   : > { %v970_v58 = vmul.f32 %v969_v56, %v950_v32  ;;  %v959_v62 = vmul.f32 %v958_v46, %v950_v32 }
 0x407   : > { %v971_v59 = vadd.f32 1.0, %v970_v58  ;;  %v960_v2 = vadd.f32 1.1283791, %v959_v62 }
 0x409   : > { %1349 = vrcp.f32 %v971_v59  ;;  %v983_v1 = vand.u32 2147483648, %v971_v59  ;;  %v981_v4 = vand.u32 2147483647, %v971_v59  ;;  %vm977_vm6 = vweird.f32 %v971_v59 }
 0x40a   : > { %v961_v6 = vmul.f32 %v960_v2, %v948_v30 }
 0x40b   : > { %v984_v0 = vor.u32 1.1754944e-38, %v983_v1  ;;  %vm982_vm8 = vcmp.eq.f32.partialorder %v981_v4, 8.507059e+37 }
 0x40f   : > { %v1350_v61 = vpop.eup %1349 }
 0x410   : > { %v973_v43 = vmul.f32 %v1350_v61, %v971_v59  ;;  %vm978_vm5 = vweird.f32 %v1350_v61 }
 0x411   : > { %vm979_vm7 = vmor %vm977_vm6, %vm978_vm5 }
 0x412   : > { %v974_v37 = vsub.f32 1.0, %v973_v43 }
 0x414   : > { %v975_v3 = vmul.f32 %v1350_v61, %v974_v37 }
 0x416   : > { %v976_v5 = vadd.f32 %v1350_v61, %v975_v3 }
 0x418   : > { %v980_v7 = vsel %vm979_vm7, %v1350_v61, %v976_v5 }
 0x419   : > { %v985_v9 = vsel %vm982_vm8, %v984_v0, %v980_v7 }
 0x41a   : > { %v986_v10 = vmul.f32 %v985_v9, %v961_v6 }
 0x41c   : > { %v1300_v11 = vclamps-f32 %v986_v10, 1.0 }
 0x41e   : > { %v989_v13 = vadd.f32 1.0, %v1300_v11 }
 0x420   : > { %v990_v14 = vmul.f32 %v989_v13, %v947_v12 }
 0x422   : > { %1301 = vmatmul.msk.f32.vlgmr.msra.gmra.mxu3 %vm923_vm4, %v990_v14 }
 0x4a5   : > { %v1023_v16 = vpop.f32.mrf.mxu3 }
 0x4a6   : > { %v1024_v17 = vadd.f32 %v1338_v15, %v1023_v16 }
 0x4a8   : > { %v1026_v18 = vadd.f32 %v1024_v17, %v1526_v63 }
 0x4aa   : > { %1027 = vst.msk [vmem:[%s669_s14] sm:$0xf] %vm673_vm0, %v1026_v18 }
 0x4ab PF: > { %s23_s27 = sadd.s32 1, %s1373_s27   ;;  %s1626_s25 = smov %s1369_s26 }
 0x4ac   : > { %p20_p5 = scmp.ge.s32.totalorder %s23_s27, 4   ;;  %s1627_s26 = smov %s1629_s28 }
 0x4ae   :  { %22 = sbr.rel (!%p20_p5) target bundleno = 2 (0x2), region = 138 }

// kernel: mmf_mlpmixer_forward.15
= control target key start
LH: loop header
LB: loop body
LE: loop exit
PB: predicated region body
PF: predicated region fallthrough
CT: control target
= control target key end

     0   :  { %s500_s0 = inlined_call_operand.vmem [shape: f32[2,4,192], index: 0, kind: input, shape index: {}]   ;;  %s501_s1 = inlined_call_operand.vmem [shape: f32[1,192], index: 1, kind: input, shape index: {}]   ;;  %s502_s2 = inlined_call_operand.vmem [shape: f32[1,192], index: 2, kind: input, shape index: {}]   ;;  %s503_s3 = inlined_call_operand.vmem [shape: f32[192,5], index: 3, kind: input, shape index: {}]   ;;  %s504_s4 = inlined_call_operand.vmem [shape: f32[1,5], index: 4, kind: input, shape index: {}]   ;;  %s505_s5 = inlined_call_operand.hbm [shape: f32[2,5], index: 5, kind: output, shape index: {}]  }
   0x1   :  { %v21_v0 = vld [vmem:[%s500_s0] sm:$0xff]  ;;  %v22_v1 = vld [vmem:[%s500_s0 + $0x8] sm:$0xff] }
   0x2   :  { %27 = vst [vmem:[#allocation1] ss:$2 sm:$0xff] %v21_v0 }
   0x3   :  { %31 = vst [vmem:[#allocation1 + $0x10] ss:$2 sm:$0xff] %v22_v1 }
   0x4   :  { %10 = vsyncpa [#allocation3], 0  ;;  %vm38_vm0 = vcmask 1043456   ;;  %vm40_vm1 = vcmask 519168   ;;  %v341_v12 = vmov 192.0   ;;  %v219_v42 = vld [vmem:[%s503_s3 + $0x78] sm:$0xff] }
   0x5   :  { %307 = vrcp.f32 %v341_v12  ;;  %v342_v18 = vmov 839922192   ;;  %243 = vmatpush.msra.mxu0 %v219_v42  ;;  %v218_v45 = vld [vmem:[%s503_s3 + $0x70] sm:$0xff]  ;;  %v217_v47 = vld [vmem:[%s503_s3 + $0x68] sm:$0xff]  ;;  %v216_v48 = vld [vmem:[%s503_s3 + $0x60] sm:$0xff]  ;;  %vm236_vm10 = vcmask 1041409  }
   0x6   :  { %v62_v19 = vunpack.c.l.s4 %v342_v18  ;;  %v215_v49 = vld [vmem:[%s503_s3 + $0x58] sm:$0xff]  ;;  %v214_v50 = vld [vmem:[%s503_s3 + $0x50] sm:$0xff]  ;;  %v213_v54 = vld [vmem:[%s503_s3 + $0x48] sm:$0xff]  ;;  %vm240_vm11 = vcmask 523264   ;;  %s344_s21 = smov [#allocation2]   ;;  %s292_s24 = sshll.u32 %s505_s5, 4  ;;  %s293_s24 = int_to_ptr.hbm [resolvable:$true] %s292_s24 }
   0x7   :  { %244 = vmatpush.msra.mxu0 %v218_v45  ;;  %v227_v52 = vld [vmem:[%s503_s3 + $0xb8] sm:$0xff]  ;;  %v226_v55 = vld [vmem:[%s503_s3 + $0xb0] sm:$0xff]  ;;  %v225_v56 = vld [vmem:[%s503_s3 + $0xa8] sm:$0xff]  ;;  %s290_s0 = sshll.u32 %s344_s21, 4  ;;  %vm283_vm12 = vcmask 33792   ;;  %s291_s0 = int_to_ptr.vmem [resolvable:$true] %s290_s0 }
   0x8   :  { %v385_v21 = vunpack.c.0.s8 %v62_v19  ;;  %271 = vmatpush.msra.mxu1 %v227_v52  ;;  %v212_v59 = vld [vmem:[%s503_s3 + $0x40] sm:$0xff]  ;;  %v211_v63 = vld [vmem:[%s503_s3 + $0x38] sm:$0xff] }
   0x9   :  { %v28_v2 = vld.sshfl [vmem:[#allocation1] sm:$0xff pattern:$0x75316420]  ;;  %v29_v3 = vld.sshfl [vmem:[#allocation1 + $0x8] sm:$0xff pattern:$0x75316420]  ;;  %245 = vmatpush.msra.mxu0 %v217_v47 }
   0xa   :  { %v39_v4 = vsel %vm38_vm0, %v28_v2, 0.0  ;;  %v41_v5 = vsel %vm40_vm1, %v29_v3, 0.0  ;;  %v32_v7 = vld.sshfl [vmem:[#allocation1 + $0x10] sm:$0xff pattern:$0x75316420]  ;;  %272 = vmatpush.msra.mxu1 %v226_v55  ;;  %v224_v61 = vld [vmem:[%s503_s3 + $0xa0] sm:$0xff] }
   0xb   :  { %v42_v6 = vadd.f32 %v41_v5, %v39_v4  ;;  %v33_v8 = vld.sshfl [vmem:[#allocation1 + $0x18] sm:$0xff pattern:$0x75316420]  ;;  %v45_v9 = vsel %vm38_vm0, %v32_v7, 0.0  ;;  %v308_v13 = vpop.eup %307  ;;  %246 = vmatpush.msra.mxu0 %v216_v48  ;;  %v23_v62 = vld [vmem:[%s501_s1] sm:$0x3] }
   0xc   :  { %v46_v10 = vsel %vm40_vm1, %v33_v8, 0.0  ;;  %v51_v14 = vmul.f32 192.0, %v308_v13  ;;  %vm55_vm2 = vweird.f32 %v308_v13  ;;  %273 = vmatpush.msra.mxu1 %v225_v56  ;;  %v24_v2 = vld [vmem:[%s502_s2] sm:$0x3]  ;;  %v210_v3 = vld [vmem:[%s503_s3 + $0x30] sm:$0xff]  ;;  %v138_v4 = vperm.slane %v23_v62, 1 }
   0xd   :  { %43 = vadd.xlane.f32.xlu0 %v42_v6  ;;  %v47_v11 = vadd.f32 %v46_v10, %v45_v9  ;;  %247 = vmatpush.msra.mxu0 %v215_v49  ;;  %v222_v6 = vld [vmem:[%s503_s3 + $0x90] sm:$0xff]  ;;  %v209_v7 = vld [vmem:[%s503_s3 + $0x28] sm:$0xff]  ;;  %v146_v8 = vperm.slane %v24_v2, 1  ;;  %v137_v12 = vperm.slane %v23_v62, 0  ;;  %v207_v18 = vld [vmem:[%s503_s3 + $0x18] sm:$0xff]  ;;  %v145_v19 = vperm.slane %v24_v2, 0 }
   0xe   :  { %v52_v15 = vsub.f32 1.0, %v51_v14  ;;  %274 = vmatpush.msra.mxu1 %v224_v61  ;;  %v221_v10 = vld [vmem:[%s503_s3 + $0x88] sm:$0xff]  ;;  %v139_v14 = vrot.slane %v138_v4, 4 }
   0xf   :  { %248 = vmatpush.msra.mxu0 %v214_v50 }
  0x10   :  { %v53_v16 = vmul.f32 %v308_v13, %v52_v15 }
  0x11   :  { %249 = vmatpush.msra.mxu0 %v213_v54 }
  0x12   :  { %v54_v17 = vadd.f32 %v308_v13, %v53_v16 }
  0x13   :  { %250 = vmatpush.msra.mxu0 %v212_v59 }
  0x14   :  { %v56_v20 = vsel %vm55_vm2, %v308_v13, %v54_v17  ;;  %v208_v13 = vld [vmem:[%s503_s3 + $0x20] sm:$0xff] }
  0x15   :  { %48 = vadd.xlane.f32.xlu0 %v47_v11  ;;  %251 = vmatpush.msra.mxu0 %v211_v63  ;;  %v220_v17 = vld [vmem:[%s503_s3 + $0x80] sm:$0xff] }
  0x17   :  { %252 = vmatpush.msra.mxu0 %v210_v3 }
  0x19   :  { %253 = vmatpush.msra.mxu0 %v209_v7 }
  0x1b   :  { %254 = vmatpush.msra.mxu0 %v208_v13 }
  0x1d   :  { %255 = vmatpush.msra.mxu0 %v207_v18 }
  0x80   :  { %v44_v22 = vpop.xlane.xlu0 %43 }
  0x81   :  { %v57_v23 = vmul.f32 %v56_v20, %v44_v22 }
  0x83   :  { %v64_v24 = vperm.slane %v57_v23, %v385_v21 }
  0x85   :  { %v388_v25 = vsub.f32 %v21_v0, %v64_v24 }
  0x87   :  { %v73_v26 = vmul.f32 %v388_v25, %v388_v25 }
  0x88   :  { %v49_v27 = vpop.xlane.xlu0 %48 }
  0x89   :  { %77 = vst [vmem:[#allocation1] ss:$2 sm:$0xff] %v73_v26  ;;  %v58_v28 = vmul.f32 %v56_v20, %v49_v27  ;;  %v206_v26 = vld [vmem:[%s503_s3 + $0x10] sm:$0xff]  ;;  %v140_v27 = vsel %vm38_vm0, %v137_v12, %v139_v14 }
  0x8a   :  { %256 = vmatpush.msra.mxu0 %v206_v26 }
  0x8b   :  { %v68_v29 = vperm.slane %v58_v28, %v385_v21 }
  0x8d   :  { %v393_v30 = vsub.f32 %v22_v1, %v68_v29  ;;  %v223_v1 = vld [vmem:[%s503_s3 + $0x98] sm:$0xff] }
  0x8e   :  { %275 = vmatpush.msra.mxu1 %v223_v1 }
  0x8f   :  { %v74_v31 = vmul.f32 %v393_v30, %v393_v30 }
  0x90   :  { %v78_v32 = vld.sshfl [vmem:[#allocation1] sm:$0xff pattern:$0x75316420]  ;;  %v79_v33 = vld.sshfl [vmem:[#allocation1 + $0x8] sm:$0xff pattern:$0x75316420]  ;;  %276 = vmatpush.msra.mxu1 %v222_v6 }
  0x91   :  { %81 = vst [vmem:[#allocation1 + $0x10] ss:$2 sm:$0xff] %v74_v31  ;;  %v88_v34 = vsel %vm38_vm0, %v78_v32, 0.0  ;;  %v89_v35 = vsel %vm40_vm1, %v79_v33, 0.0  ;;  %v205_v31 = vld [vmem:[%s503_s3 + $0x8] sm:$0xff] }
  0x92   :  { %v90_v36 = vadd.f32 %v89_v35, %v88_v34  ;;  %277 = vmatpush.msra.mxu1 %v221_v10  ;;  %v204_v35 = vld [vmem:[%s503_s3] sm:$0xff]  ;;  %257 = vmatpush.msra.mxu0 %v205_v31 }
  0x94   :  { %91 = vadd.xlane.f32.xlu1 %v90_v36  ;;  %278 = vmatpush.msra.mxu1 %v220_v17 }
  0x95   :  { %258 = vmatpush.msra.mxu0 %v204_v35 }
  0x98   :  { %v82_v37 = vld.sshfl [vmem:[#allocation1 + $0x10] sm:$0xff pattern:$0x75316420]  ;;  %v83_v38 = vld.sshfl [vmem:[#allocation1 + $0x18] sm:$0xff pattern:$0x75316420] }
  0x99   :  { %v93_v39 = vsel %vm38_vm0, %v82_v37, 0.0  ;;  %v94_v40 = vsel %vm40_vm1, %v83_v38, 0.0 }
  0x9a   :  { %v95_v41 = vadd.f32 %v94_v40, %v93_v39  ;;  %v343_v39 = vmov 4.0  }
  0x9c   :  { %96 = vadd.xlane.f32.xlu1 %v95_v41 }
 0x107   :  { %v92_v43 = vpop.xlane.xlu1 %91 }
 0x108   :  { %v98_v44 = vmul.f32 %v92_v43, %v56_v20 }
 0x10a   :  { %v100_v46 = vadd.f32 1e-05, %v98_v44 }
 0x10c   :  { %309 = vrsqrt.f32 %v100_v46  ;;  %vm108_vm4 = vweird.f32 %v100_v46 }
 0x10f   :  { %v97_v51 = vpop.xlane.xlu1 %96 }
 0x110   :  { %v99_v53 = vmul.f32 %v97_v51, %v56_v20  ;;  %v147_v20 = vrot.slane %v146_v8, 4 }
 0x112   :  { %v310_v57 = vpop.eup %309  ;;  %v431_v58 = vadd.f32 1e-05, %v99_v53  ;;  %v148_v32 = vsel %vm38_vm0, %v145_v19, %v147_v20 }
 0x113   :  { %v103_v60 = vmul.f32 %v310_v57, %v100_v46  ;;  %vm109_vm3 = vweird.f32 %v310_v57 }
 0x114   :  { %311 = vrsqrt.f32 %v431_v58  ;;  %vm110_vm5 = vmor %vm108_vm4, %vm109_vm3  ;;  %vm118_vm7 = vweird.f32 %v431_v58 }
 0x115   :  { %v104_v0 = vmul.f32 %v310_v57, %v103_v60  ;;  %313 = vrcp.f32 %v343_v39 }
 0x117   :  { %v105_v5 = vmul.f32 0.5, %v104_v0 }
 0x119   :  { %v106_v9 = vsub.f32 1.5, %v105_v5 }
 0x11a   :  { %v312_v11 = vpop.eup %311 }
 0x11b   :  { %v107_v15 = vmul.f32 %v310_v57, %v106_v9  ;;  %v113_v16 = vmul.f32 %v312_v11, %v431_v58  ;;  %vm119_vm6 = vweird.f32 %v312_v11  ;;  %v314_v43 = vpop.eup %313 }
 0x11c   :  { %vm120_vm8 = vmor %vm118_vm7, %vm119_vm6  ;;  %v194_v50 = vmul.f32 4.0, %v314_v43  ;;  %vm198_vm9 = vweird.f32 %v314_v43 }
 0x11d   :  { %v111_v22 = vsel %vm110_vm5, %v310_v57, %v107_v15  ;;  %v114_v23 = vmul.f32 %v312_v11, %v113_v16 }
 0x11e   :  { %v127_v24 = vperm.slane %v111_v22, %v385_v21  ;;  %v195_v54 = vsub.f32 1.0, %v194_v50  ;;  %v306_v22 = vld [vmem:[%s504_s4] ss:$0 sm:$0xff] }
 0x11f   :  { %v115_v28 = vmul.f32 0.5, %v114_v23 }
 0x120   :  { %v134_v29 = vmul.f32 %v127_v24, %v388_v25  ;;  %v196_v62 = vmul.f32 %v314_v43, %v195_v54 }
 0x121   :  { %v116_v33 = vsub.f32 1.5, %v115_v28 }
 0x122   :  { %v142_v34 = vmul.f32 %v140_v27, %v134_v29  ;;  %v197_v5 = vadd.f32 %v314_v43, %v196_v62 }
 0x123   :  { %v117_v36 = vmul.f32 %v312_v11, %v116_v33 }
 0x124   :  { %v150_v37 = vadd.f32 %v148_v32, %v142_v34  ;;  %v199_v12 = vsel %vm198_vm9, %v314_v43, %v197_v5 }
 0x125   :  { %v121_v25 = vsel %vm120_vm8, %v312_v11, %v117_v36 }
 0x126   :  { %154 = vst [vmem:[#allocation1] ss:$2 sm:$0xff] %v150_v37  ;;  %v131_v38 = vperm.slane %v121_v25, %v385_v21 }
 0x128   :  { %v135_v40 = vmul.f32 %v131_v38, %v393_v30 }
 0x12a   :  { %v143_v41 = vmul.f32 %v140_v27, %v135_v40 }
 0x12c   :  { %v151_v42 = vadd.f32 %v148_v32, %v143_v41 }
 0x12d   :  { %v155_v44 = vld.sshfl [vmem:[#allocation1] sm:$0xff pattern:$0x75316420]  ;;  %v156_v45 = vld.sshfl [vmem:[#allocation1 + $0x8] sm:$0xff pattern:$0x75316420] }
 0x12e   :  { %158 = vst [vmem:[#allocation1 + $0x10] ss:$2 sm:$0xff] %v151_v42  ;;  %v165_v46 = vsel %vm38_vm0, %v155_v44, 0.0  ;;  %v172_v47 = vsel %vm40_vm1, %v156_v45, 0.0 }
 0x12f   :  { %v166_v48 = vrot.slane %v165_v46, 4  ;;  %v173_v49 = vrot.slane %v172_v47, 4 }
 0x131   :  { %v167_v51 = vadd.f32 %v166_v48, %v165_v46  ;;  %v174_v52 = vadd.f32 %v173_v49, %v172_v47 }
 0x133   :  { %v168_v21 = vrot.slane %v167_v51, 2  ;;  %v175_v53 = vrot.slane %v174_v52, 2 }
 0x135   :  { %v159_v55 = vld.sshfl [vmem:[#allocation1 + $0x10] sm:$0xff pattern:$0x75316420]  ;;  %v160_v30 = vld.sshfl [vmem:[#allocation1 + $0x18] sm:$0xff pattern:$0x75316420]  ;;  %v169_v58 = vadd.f32 %v168_v21, %v167_v51  ;;  %v176_v60 = vadd.f32 %v175_v53, %v174_v52 }
 0x136   :  { %v179_v56 = vsel %vm38_vm0, %v159_v55, 0.0  ;;  %v186_v57 = vsel %vm40_vm1, %v160_v30, 0.0 }
 0x137   :  { %v180_v59 = vrot.slane %v179_v56, 4  ;;  %v187_v61 = vrot.slane %v186_v57, 4  ;;  %v170_v1 = vrot.slane %v169_v58, 1  ;;  %v177_v3 = vrot.slane %v176_v60, 1 }
 0x139   :  { %v181_v63 = vadd.f32 %v180_v59, %v179_v56  ;;  %v188_v0 = vadd.f32 %v187_v61, %v186_v57  ;;  %v171_v8 = vadd.f32 %v170_v1, %v169_v58  ;;  %v178_v10 = vadd.f32 %v177_v3, %v176_v60 }
 0x13b   :  { %v182_v2 = vrot.slane %v181_v63, 2  ;;  %v189_v4 = vrot.slane %v188_v0, 2  ;;  %v200_v15 = vmul.f32 %v199_v12, %v171_v8  ;;  %v201_v17 = vmul.f32 %v199_v12, %v178_v10 }
 0x13d   :  { %v183_v6 = vadd.f32 %v182_v2, %v181_v63  ;;  %v190_v7 = vadd.f32 %v189_v4, %v188_v0 }
 0x13f   :  { %v184_v9 = vrot.slane %v183_v6, 1  ;;  %v191_v11 = vrot.slane %v190_v7, 1 }
 0x141   :  { %v185_v13 = vadd.f32 %v184_v9, %v183_v6  ;;  %v192_v14 = vadd.f32 %v191_v11, %v190_v7 }
 0x143   :  { %v202_v16 = vmul.f32 %v199_v12, %v185_v13  ;;  %v203_v18 = vmul.f32 %v199_v12, %v192_v14 }
 0x145   :  { %v237_v19 = vsel %vm236_vm10, %v202_v16, %v200_v15  ;;  %v238_v20 = vsel %vm236_vm10, %v203_v18, %v201_v17 }
 0x146   :  { %259 = vmatmul.f32.vlgmr.msra.gmra.mxu0 %v237_v19  ;;  %301 = vmatmul.msk.f32.vlgmr.msra.gmra.mxu1 %vm240_vm11, %v238_v20 }
 0x1c3   :  { %v260_v23 = vpop.f32.mrf.mxu0  ;;  %v280_v26 = vpop.f32.mrf.mxu1 }
 0x1c4   :  { %v261_v24 = vadd.f32 %v306_v22, %v260_v23 }
 0x1c6   :  { %v281_v27 = vadd.f32 %v280_v26, %v261_v24 }
 0x1c8   :  { %284 = vst.msk [vmem:[#allocation2] sm:$0x3] %vm283_vm12, %v281_v27 }
 0x1c9   :  { %295 = dma.vmem_to_hbm [thread:$0]  %s291_s0, 32, %s293_s24, [#allocation3]  }
 0x1ca   :  { %339 = dma.done.wait [#allocation3], 32  }
 0x1cb   :  { %340 = vsyncadd [#allocation3], 4294967264 }
 0x1cc   :  { %300 = vsyncpa [#allocation3], 1 }

</bundles_post_ra>
